<compile_context>
chip_gen: v7x
topology: tpu7x:2x2x1
jax: 0.10.0
libtpu: 0.0.40
codegen_flags: <defaults>
</compile_context>

<pallas_src>
import jax
import jax.numpy as jnp
from jax.experimental import pallas as pl
from jax.experimental.pallas import tpu as pltpu


# ------------------------------- kernel -------------------------------------
def _tks_kernel(x3a_ref, x3b_ref, w1_ref, w2_ref, fc1w_ref, fc1s_ref, fc1b_ref,
                fc2a_ref, fc2b_ref, ws_ref, wb_ref, z_ref):
    BB, R, C = z_ref.shape

    xa = x3a_ref[...].reshape(BB * R, 3 * C)                 # bf16 [BB*48, 3C]
    xb = x3b_ref[...].reshape(BB * R, 3 * C)

    # Two bf16 MXU dots with f32 accumulation (one per temporal conv branch).
    y1 = jnp.dot(xa, w1_ref[...], preferred_element_type=jnp.float32)   # [BB*48, C]
    y2 = jnp.dot(xb, w2_ref[...], preferred_element_type=jnp.float32)

    y1r = y1.reshape(BB, R, C)
    y2r = y2.reshape(BB, R, C)

    # Global average pool over all (t, h', w') positions, per batch element.
    u = jnp.mean(y1r + y2r, axis=1)                                      # [BB, C]

    # fc1 (+folded BN, ReLU) and fc2 on VPU/XLU: with D = C // 16 these are
    # tiny M~1 dots (pure MXU latency), so compute them as broadcast-multiply
    # + cross-lane reduce instead.  fc2 is split into its two C-wide halves so
    # the softmax branches are lane-aligned at 0:C.
    D = fc1w_ref.shape[0]
    a1 = jnp.zeros((BB, C), jnp.float32)
    a2 = jnp.zeros((BB, C), jnp.float32)
    for d in range(D):                                        # D is a static int
        sd = jnp.sum(u * fc1w_ref[d:d + 1, :], axis=-1, keepdims=True)   # [BB, 1]
        sd = jnp.maximum(sd * fc1s_ref[:, d:d + 1] + fc1b_ref[:, d:d + 1], 0.0)
        a1 = a1 + sd * fc2a_ref[d:d + 1, :]                               # [BB, C]
        a2 = a2 + sd * fc2b_ref[d:d + 1, :]

    # 2-way softmax over the branch axis, per channel.
    m = jnp.maximum(a1, a2)
    e1 = jnp.exp(a1 - m)
    e2 = jnp.exp(a2 - m)
    inv = pl.reciprocal(e1 + e2, approx=True)
    g1 = (e1 * inv)[:, None, :]                                           # [BB,1,C]
    g2 = (e2 * inv)[:, None, :]

    # Selective combine + folded W BatchNorm (inference affine, per channel).
    z = (y1r * g1 + y2r * g2) * ws_ref[...] + wb_ref[...]                 # [BB,48,C]
    z_ref[...] = z.astype(z_ref.dtype)


# ------------------------------ parameters ----------------------------------
def _fold_bn(gamma, beta, mean, var, eps=1e-5):
    scale = gamma / jnp.sqrt(var + eps)
    shift = beta - mean * scale
    return scale, shift


def init_params(key, C, nontrivial_bn=False):
    """Synthetic parameters matching TKS.__init__ shapes.

    Conv weights use layout [kT, cin, cout] (= torch weight.permute(2,1,0)
    with the 1x1 spatial dims squeezed).
    """
    D = C // 16
    ks = jax.random.split(key, 12)
    w1 = jax.random.normal(ks[0], (3, C, C), jnp.float32) * 0.05
    w2 = jax.random.normal(ks[1], (3, C, C), jnp.float32) * 0.05
    fc1w = jax.random.normal(ks[2], (C, D), jnp.float32) * 0.05
    fc2w = jax.random.normal(ks[3], (D, 2 * C), jnp.float32) * 0.05

    if nontrivial_bn:
        fc1_g = 1.0 + 0.1 * jax.random.normal(ks[4], (D,), jnp.float32)
        fc1_b = 0.1 * jax.random.normal(ks[5], (D,), jnp.float32)
        fc1_m = 0.1 * jax.random.normal(ks[6], (D,), jnp.float32)
        fc1_v = jnp.abs(1.0 + 0.1 * jax.random.normal(ks[7], (D,), jnp.float32))
        w_g = 1.0 + 0.1 * jax.random.normal(ks[8], (C,), jnp.float32)
        w_b = 0.1 * jax.random.normal(ks[9], (C,), jnp.float32)
        w_m = 0.1 * jax.random.normal(ks[10], (C,), jnp.float32)
        w_v = jnp.abs(1.0 + 0.1 * jax.random.normal(ks[11], (C,), jnp.float32))
    else:
        # PyTorch defaults; W batch-norm weight = bias = 0 exactly as __init__.
        fc1_g, fc1_b = jnp.ones((D,)), jnp.zeros((D,))
        fc1_m, fc1_v = jnp.zeros((D,)), jnp.ones((D,))
        w_g, w_b = jnp.zeros((C,)), jnp.zeros((C,))
        w_m, w_v = jnp.zeros((C,)), jnp.ones((C,))

    fc1_scale, fc1_shift = _fold_bn(fc1_g, fc1_b, fc1_m, fc1_v)
    w_scale, w_shift = _fold_bn(w_g, w_b, w_m, w_v)
    return dict(w1=w1, w2=w2, fc1w=fc1w, fc2w=fc2w,
                fc1_scale=fc1_scale, fc1_shift=fc1_shift,
                w_scale=w_scale, w_shift=w_shift)


# ------------------------------- wrapper ------------------------------------
def make_tks_forward(n_blocks, core_parallel):
    """Builds the jitted forward. n_blocks = grid size (batch is folded into
    the block); core_parallel = use CORE_PARALLEL sharding (v7x, 2 TCs)."""

    @jax.jit
    def tks_forward(x1, x2, params):
        B, C, T1, H1, W1 = x1.shape
        _, _, T2, H2, W2 = x2.shape
        k1, k2 = 8, 4                                # squeeze_size, squeeze_size//2
        SP = (H1 // k1) * (W1 // k1)                 # pooled positions per frame (8)
        nframes = T1 + T2                            # 6
        nrows = nframes * SP                         # 48
        D = params["fc1w"].shape[1]

        # --- AvgPool3d((1,k,k)) + channels-last row layout, fused by XLA ----
        def pool_rows(x, k):
            b, c, t, h, w = x.shape
            p = x.reshape(b, c, t, h // k, k, w // k, k).mean(axis=(4, 6))
            return jnp.transpose(p.reshape(b, c, t * (h // k) * (w // k)), (0, 2, 1))

        p1 = pool_rows(x1, k1)                       # [B, T1*SP, C]
        p2 = pool_rows(x2, k2)                       # [B, T2*SP, C]

        # temporal concat: frames [x1_0, x2_0, x2_1, x2_2, x1_1, x2_3]
        xcat = jnp.concatenate([p1[:, :SP], p2[:, :3 * SP],
                                p1[:, SP:], p2[:, 3 * SP:]], axis=1)     # [B, 48, C]

        # zero-pad 2 frames per side and build the frame-shifted views.
        xp = jnp.pad(xcat, ((0, 0), (2 * SP, 2 * SP), (0, 0)))
        view = lambda off: xp[:, off:off + nrows]
        # conv1 taps (pad 1, dil 1) see frames t-1, t, t+1
        # conv2 taps (pad 2, dil 2) see frames t-2, t, t+2
        x3a = jnp.concatenate([view(SP), view(2 * SP), view(3 * SP)],
                              axis=-1).astype(jnp.bfloat16)              # [B,48,3C]
        x3b = jnp.concatenate([view(0), view(2 * SP), view(4 * SP)],
                              axis=-1).astype(jnp.bfloat16)              # [B,48,3C]

        # Fold batch into the block; grid only over TensorCore shards.
        nb = n_blocks if B >= n_blocks else 1
        BB = -(-B // nb)
        Bp = nb * BB
        if Bp != B:
            pad = ((0, Bp - B), (0, 0), (0, 0))
            x3a = jnp.pad(x3a, pad)
            x3b = jnp.pad(x3b, pad)

        # Per-branch conv weights stacked over taps: [3C, C], bf16 for the MXU.
        w1c = params["w1"].reshape(3 * C, C).astype(jnp.bfloat16)
        w2c = params["w2"].reshape(3 * C, C).astype(jnp.bfloat16)
        fc1wT = params["fc1w"].T                      # [D, C] (VPU path, keep f32)
        fc2wa = params["fc2w"][:, :C]                 # gate for y1
        fc2wb = params["fc2w"][:, C:]                 # gate for y2

        const = lambda i: (0, 0)
        sem = (pltpu.CORE_PARALLEL,) if core_parallel else ("arbitrary",)

        z = pl.pallas_call(
            _tks_kernel,
            grid=(nb,),
            in_specs=[
                pl.BlockSpec((BB, nrows, 3 * C), lambda i: (i, 0, 0)),
                pl.BlockSpec((BB, nrows, 3 * C), lambda i: (i, 0, 0)),
                pl.BlockSpec((3 * C, C), const),
                pl.BlockSpec((3 * C, C), const),
                pl.BlockSpec((D, C), const),
                pl.BlockSpec((1, D), const),
                pl.BlockSpec((1, D), const),
                pl.BlockSpec((D, C), const),
                pl.BlockSpec((D, C), const),
                pl.BlockSpec((1, C), const),
                pl.BlockSpec((1, C), const),
            ],
            out_specs=pl.BlockSpec((BB, nrows, C), lambda i: (i, 0, 0)),
            out_shape=jax.ShapeDtypeStruct((Bp, nrows, C), jnp.float32),
            compiler_params=pltpu.CompilerParams(dimension_semantics=sem),
        )(x3a, x3b, w1c, w2c, fc1wT,
          params["fc1_scale"].reshape(1, D), params["fc1_shift"].reshape(1, D),
          fc2wa, fc2wb,
          params["w_scale"].reshape(1, C), params["w_shift"].reshape(1, C))
        z = z[:B]

        # split frames back: z1 <- frames {0,4}, z2 <- frames {1,2,3,5}
        z1r = jnp.concatenate([z[:, :SP], z[:, 4 * SP:5 * SP]], axis=1)  # [B,T1*SP,C]
        z2r = jnp.concatenate([z[:, SP:4 * SP], z[:, 5 * SP:]], axis=1)  # [B,T2*SP,C]

        # nearest upsample over the pool window + residual (fused by XLA)
        def unpool_add(zr, ref_x, k):
            b, c, t, h, w = ref_x.shape
            hp, wp = h // k, w // k
            zr = jnp.transpose(zr, (0, 2, 1)).reshape(b, c, t, hp, wp)
            zr = jnp.broadcast_to(zr[:, :, :, :, None, :, None],
                                  (b, c, t, hp, k, wp, k)).reshape(b, c, t, h, w)
            return zr + ref_x

        return unpool_add(z1r, x1, k1), unpool_add(z2r, x2, k2)

    return tks_forward


def _default_config(batch_size):
    """Pick grid layout from the attached TPU generation."""
    kind = jax.devices()[0].device_kind.lower()
    two_tc = ("v7" in kind) or ("tpu7" in kind)
    if two_tc and batch_size >= 2:
        return 2, True          # grid of 2, CORE_PARALLEL -> both TensorCores
    return 1, False             # single-TC chips: fold whole batch, one step


# ----------------------- pure-JAX reference (eval-mode BN) ------------------
@jax.jit
def tks_reference(x1, x2, params):
    k1, k2 = 8, 4
    B, C, T1, H1, W1 = x1.shape
    _, _, T2, H2, W2 = x2.shape

    def avgpool(x, k):
        b, c, t, h, w = x.shape
        return x.reshape(b, c, t, h // k, k, w // k, k).mean(axis=(4, 6))

    p1 = avgpool(x1, k1)
    p2 = avgpool(x2, k2)
    x = jnp.concatenate([p1[:, :, :1], p2[:, :, :3],
                         p1[:, :, 1:], p2[:, :, 3:]], axis=2)            # [B,C,6,4,2]

    def tconv(xin, w, pad, dil):
        b, c, t, h, wd = xin.shape
        xe = jnp.pad(xin, ((0, 0), (0, 0), (pad, pad), (0, 0), (0, 0)))
        y = jnp.zeros((b, c, t, h, wd), jnp.float32)
        for k in range(3):
            y = y + jnp.einsum('bithw,io->bothw',
                               xe[:, :, k * dil:k * dil + t], w[k])
        return y

    y1 = tconv(x, params["w1"], 1, 1)
    y2 = tconv(x, params["w2"], 2, 2)

    u = (y1 + y2).mean(axis=(2, 3, 4))                                   # [B,C]
    s = u @ params["fc1w"]
    s = jnp.maximum(s * params["fc1_scale"] + params["fc1_shift"], 0.0)
    ab = s @ params["fc2w"]                                              # [B,2C]
    a1, a2 = ab[:, :C], ab[:, C:]
    m = jnp.maximum(a1, a2)
    e1, e2 = jnp.exp(a1 - m), jnp.exp(a2 - m)
    a1, a2 = e1 / (e1 + e2), e2 / (e1 + e2)

    z = y1 * a1[:, :, None, None, None] + y2 * a2[:, :, None, None, None]
    z = (z * params["w_scale"][None, :, None, None, None]
         + params["w_shift"][None, :, None, None, None])

    z1 = jnp.concatenate([z[:, :, 0:1], z[:, :, 4:5]], axis=2)
    z2 = jnp.concatenate([z[:, :, 1:4], z[:, :, 5:]], axis=2)

    def upsample(zz, k, h, w):
        b, c, t = zz.shape[:3]
        zz = zz.reshape(b, c, t, h // k, 1, w // k, 1)
        zz = jnp.broadcast_to(zz, (b, c, t, h // k, k, w // k, k))
        return zz.reshape(b, c, t, h, w)

    return upsample(z1, k1, H1, W1) + x1, upsample(z2, k2, H2, W2) + x2


# --------------------------------- main -------------------------------------
if __name__ == "__main__":
    key = jax.random.PRNGKey(0)
    kx1, kx2, kp = jax.random.split(key, 3)
    B, C = 2, 32                                     # c must be divisible by 16
    # Shapes per the forward docstring: x1 [b,c,2,32,16], x2 [b,c,4,16,8]
    x1 = jax.random.normal(kx1, (B, C, 2, 32, 16), jnp.float32)
    x2 = jax.random.normal(kx2, (B, C, 4, 16, 8), jnp.float32)

    n_blocks, core_parallel = _default_config(B)
    tks_forward = make_tks_forward(n_blocks, core_parallel)

    # 1) module-default init: W batch-norm weight=bias=0 -> exact residual
    #    pass-through.
    params0 = init_params(kp, C, nontrivial_bn=False)
    try:
        z1, z2 = tks_forward(x1, x2, params0)
        jax.block_until_ready((z1, z2))
    except Exception:
        # Conservative fallback: single grid step, no core-parallel sharding.
        tks_forward = make_tks_forward(1, False)
        z1, z2 = tks_forward(x1, x2, params0)
        jax.block_until_ready((z1, z2))
    assert z1.shape == x1.shape and z2.shape == x2.shape
    assert bool(jnp.allclose(z1, x1, atol=1e-5))
    assert bool(jnp.allclose(z2, x2, atol=1e-5))

    # 2) non-trivial BN stats: validate pooling/conv/softmax/select math
    #    against the pure-JAX reference (eval-mode BN).
    params1 = init_params(kp, C, nontrivial_bn=True)
    z1, z2 = tks_forward(x1, x2, params1)
    r1, r2 = tks_reference(x1, x2, params1)
    jax.block_until_ready((z1, z2, r1, r2))
    assert bool(jnp.allclose(z1, r1, rtol=2e-2, atol=2e-3))
    assert bool(jnp.allclose(z2, r2, rtol=2e-2, atol=2e-3))

    print("KERNEL_OK")
</pallas_src>

<mosaic_0001>
module attributes {stable_mosaic.version = 11 : i64} {
  func.func @_tks_kernel(%arg0: i32, %arg1: memref<2x48x96xbf16, #tpu.memory_space<vmem>>, %arg2: memref<2x48x96xbf16, #tpu.memory_space<vmem>>, %arg3: memref<96x32xbf16, #tpu.memory_space<vmem>>, %arg4: memref<96x32xbf16, #tpu.memory_space<vmem>>, %arg5: memref<2x32xf32, #tpu.memory_space<vmem>>, %arg6: memref<1x2xf32, #tpu.memory_space<vmem>>, %arg7: memref<1x2xf32, #tpu.memory_space<vmem>>, %arg8: memref<2x32xf32, #tpu.memory_space<vmem>>, %arg9: memref<2x32xf32, #tpu.memory_space<vmem>>, %arg10: memref<1x32xf32, #tpu.memory_space<vmem>>, %arg11: memref<1x32xf32, #tpu.memory_space<vmem>>, %arg12: memref<2x48x32xf32, #tpu.memory_space<vmem>>) attributes {dimension_semantics = [#tpu.dimension_semantics<arbitrary>], iteration_bounds = array<i64: 1>, scalar_prefetch = 0 : i64, scratch_operands = 0 : i64, tpu.core_type = #tpu.core_type<tc>, window_params = [{transform_indices = @transform_0, window_bounds = array<i64: 2, 48, 96>}, {transform_indices = @transform_1, window_bounds = array<i64: 2, 48, 96>}, {pipeline_mode = #tpu.pipeline_mode<synchronous>, transform_indices = @transform_2, window_bounds = array<i64: 96, 32>}, {pipeline_mode = #tpu.pipeline_mode<synchronous>, transform_indices = @transform_3, window_bounds = array<i64: 96, 32>}, {pipeline_mode = #tpu.pipeline_mode<synchronous>, transform_indices = @transform_4, window_bounds = array<i64: 2, 32>}, {pipeline_mode = #tpu.pipeline_mode<synchronous>, transform_indices = @transform_5, window_bounds = array<i64: 1, 2>}, {pipeline_mode = #tpu.pipeline_mode<synchronous>, transform_indices = @transform_6, window_bounds = array<i64: 1, 2>}, {pipeline_mode = #tpu.pipeline_mode<synchronous>, transform_indices = @transform_7, window_bounds = array<i64: 2, 32>}, {pipeline_mode = #tpu.pipeline_mode<synchronous>, transform_indices = @transform_8, window_bounds = array<i64: 2, 32>}, {pipeline_mode = #tpu.pipeline_mode<synchronous>, transform_indices = @transform_9, window_bounds = array<i64: 1, 32>}, {pipeline_mode = #tpu.pipeline_mode<synchronous>, transform_indices = @transform_10, window_bounds = array<i64: 1, 32>}, {transform_indices = @transform_11, window_bounds = array<i64: 2, 48, 32>}]} {
    %c0 = arith.constant 0 : index
    %c0_0 = arith.constant 0 : index
    %c0_1 = arith.constant 0 : index
    %0 = vector.load %arg1[%c0, %c0_0, %c0_1] : memref<2x48x96xbf16, #tpu.memory_space<vmem>>, vector<2x48x96xbf16>
    %1 = vector.shape_cast %0 : vector<2x48x96xbf16> to vector<96x96xbf16>
    %c0_2 = arith.constant 0 : index
    %c0_3 = arith.constant 0 : index
    %c0_4 = arith.constant 0 : index
    %2 = vector.load %arg2[%c0_2, %c0_3, %c0_4] : memref<2x48x96xbf16, #tpu.memory_space<vmem>>, vector<2x48x96xbf16>
    %3 = vector.shape_cast %2 : vector<2x48x96xbf16> to vector<96x96xbf16>
    %c0_5 = arith.constant 0 : index
    %c0_6 = arith.constant 0 : index
    %4 = vector.load %arg3[%c0_5, %c0_6] : memref<96x32xbf16, #tpu.memory_space<vmem>>, vector<96x32xbf16>
    %cst = arith.constant dense<0.000000e+00> : vector<96x32xf32>
    %5 = tpu.matmul %1, %4, %cst {dimension_numbers = #tpu.dot_dimension_numbers<[1], [0], [0], [1], [0, 0, 1, 1], [], []>} : vector<96x96xbf16>, vector<96x32xbf16>, vector<96x32xf32> -> vector<96x32xf32>
    %c0_7 = arith.constant 0 : index
    %c0_8 = arith.constant 0 : index
    %6 = vector.load %arg4[%c0_7, %c0_8] : memref<96x32xbf16, #tpu.memory_space<vmem>>, vector<96x32xbf16>
    %cst_9 = arith.constant dense<0.000000e+00> : vector<96x32xf32>
    %7 = tpu.matmul %3, %6, %cst_9 {dimension_numbers = #tpu.dot_dimension_numbers<[1], [0], [0], [1], [0, 0, 1, 1], [], []>} : vector<96x96xbf16>, vector<96x32xbf16>, vector<96x32xf32> -> vector<96x32xf32>
    %8 = vector.shape_cast %5 : vector<96x32xf32> to vector<2x48x32xf32>
    %9 = vector.shape_cast %7 : vector<96x32xf32> to vector<2x48x32xf32>
    %10 = arith.addf %8, %9 : vector<2x48x32xf32>
    %cst_10 = arith.constant dense<0.000000e+00> : vector<2x32xf32>
    %11 = vector.multi_reduction <add>, %10, %cst_10 [1] : vector<2x48x32xf32> to vector<2x32xf32>
    %cst_11 = arith.constant 4.800000e+01 : f32
    %12 = vector.broadcast %cst_11 : f32 to vector<2x32xf32>
    %13 = arith.divf %11, %12 : vector<2x32xf32>
    %cst_12 = arith.constant 0.000000e+00 : f32
    %14 = vector.broadcast %cst_12 : f32 to vector<2x32xf32>
    %cst_13 = arith.constant 0.000000e+00 : f32
    %15 = vector.broadcast %cst_13 : f32 to vector<2x32xf32>
    %c0_14 = arith.constant 0 : index
    %c0_15 = arith.constant 0 : index
    %16 = vector.load %arg5[%c0_14, %c0_15] : memref<2x32xf32, #tpu.memory_space<vmem>>, vector<1x32xf32>
    %17 = vector.broadcast %16 : vector<1x32xf32> to vector<2x32xf32>
    %18 = arith.mulf %13, %17 : vector<2x32xf32>
    %cst_16 = arith.constant dense<0.000000e+00> : vector<2xf32>
    %19 = vector.multi_reduction <add>, %18, %cst_16 [1] : vector<2x32xf32> to vector<2xf32>
    %20 = vector.shape_cast %19 : vector<2xf32> to vector<2x1xf32>
    %c0_17 = arith.constant 0 : index
    %c0_18 = arith.constant 0 : index
    %21 = vector.load %arg6[%c0_17, %c0_18] : memref<1x2xf32, #tpu.memory_space<vmem>>, vector<1x1xf32>
    %22 = vector.broadcast %21 : vector<1x1xf32> to vector<2x1xf32>
    %23 = arith.mulf %20, %22 : vector<2x1xf32>
    %c0_19 = arith.constant 0 : index
    %c0_20 = arith.constant 0 : index
    %24 = vector.load %arg7[%c0_19, %c0_20] : memref<1x2xf32, #tpu.memory_space<vmem>>, vector<1x1xf32>
    %25 = vector.broadcast %24 : vector<1x1xf32> to vector<2x1xf32>
    %26 = arith.addf %23, %25 : vector<2x1xf32>
    %cst_21 = arith.constant 0.000000e+00 : f32
    %27 = vector.broadcast %cst_21 : f32 to vector<2x1xf32>
    %28 = arith.maximumf %26, %27 : vector<2x1xf32>
    %c0_22 = arith.constant 0 : index
    %c0_23 = arith.constant 0 : index
    %29 = vector.load %arg8[%c0_22, %c0_23] : memref<2x32xf32, #tpu.memory_space<vmem>>, vector<1x32xf32>
    %30 = vector.broadcast %28 : vector<2x1xf32> to vector<2x32xf32>
    %31 = vector.broadcast %29 : vector<1x32xf32> to vector<2x32xf32>
    %32 = arith.mulf %30, %31 : vector<2x32xf32>
    %33 = arith.addf %14, %32 : vector<2x32xf32>
    %c0_24 = arith.constant 0 : index
    %c0_25 = arith.constant 0 : index
    %34 = vector.load %arg9[%c0_24, %c0_25] : memref<2x32xf32, #tpu.memory_space<vmem>>, vector<1x32xf32>
    %35 = vector.broadcast %28 : vector<2x1xf32> to vector<2x32xf32>
    %36 = vector.broadcast %34 : vector<1x32xf32> to vector<2x32xf32>
    %37 = arith.mulf %35, %36 : vector<2x32xf32>
    %38 = arith.addf %15, %37 : vector<2x32xf32>
    %c1 = arith.constant 1 : index
    %c0_26 = arith.constant 0 : index
    %39 = vector.load %arg5[%c1, %c0_26] : memref<2x32xf32, #tpu.memory_space<vmem>>, vector<1x32xf32>
    %40 = vector.broadcast %39 : vector<1x32xf32> to vector<2x32xf32>
    %41 = arith.mulf %13, %40 : vector<2x32xf32>
    %cst_27 = arith.constant dense<0.000000e+00> : vector<2xf32>
    %42 = vector.multi_reduction <add>, %41, %cst_27 [1] : vector<2x32xf32> to vector<2xf32>
    %43 = vector.shape_cast %42 : vector<2xf32> to vector<2x1xf32>
    %c0_28 = arith.constant 0 : index
    %c1_29 = arith.constant 1 : index
    %44 = vector.load %arg6[%c0_28, %c1_29] : memref<1x2xf32, #tpu.memory_space<vmem>>, vector<1x1xf32>
    %45 = vector.broadcast %44 : vector<1x1xf32> to vector<2x1xf32>
    %46 = arith.mulf %43, %45 : vector<2x1xf32>
    %c0_30 = arith.constant 0 : index
    %c1_31 = arith.constant 1 : index
    %47 = vector.load %arg7[%c0_30, %c1_31] : memref<1x2xf32, #tpu.memory_space<vmem>>, vector<1x1xf32>
    %48 = vector.broadcast %47 : vector<1x1xf32> to vector<2x1xf32>
    %49 = arith.addf %46, %48 : vector<2x1xf32>
    %cst_32 = arith.constant 0.000000e+00 : f32
    %50 = vector.broadcast %cst_32 : f32 to vector<2x1xf32>
    %51 = arith.maximumf %49, %50 : vector<2x1xf32>
    %c1_33 = arith.constant 1 : index
    %c0_34 = arith.constant 0 : index
    %52 = vector.load %arg8[%c1_33, %c0_34] : memref<2x32xf32, #tpu.memory_space<vmem>>, vector<1x32xf32>
    %53 = vector.broadcast %51 : vector<2x1xf32> to vector<2x32xf32>
    %54 = vector.broadcast %52 : vector<1x32xf32> to vector<2x32xf32>
    %55 = arith.mulf %53, %54 : vector<2x32xf32>
    %56 = arith.addf %33, %55 : vector<2x32xf32>
    %c1_35 = arith.constant 1 : index
    %c0_36 = arith.constant 0 : index
    %57 = vector.load %arg9[%c1_35, %c0_36] : memref<2x32xf32, #tpu.memory_space<vmem>>, vector<1x32xf32>
    %58 = vector.broadcast %51 : vector<2x1xf32> to vector<2x32xf32>
    %59 = vector.broadcast %57 : vector<1x32xf32> to vector<2x32xf32>
    %60 = arith.mulf %58, %59 : vector<2x32xf32>
    %61 = arith.addf %38, %60 : vector<2x32xf32>
    %62 = arith.maximumf %56, %61 : vector<2x32xf32>
    %63 = arith.subf %56, %62 : vector<2x32xf32>
    %64 = math.exp %63 : vector<2x32xf32>
    %65 = arith.subf %61, %62 : vector<2x32xf32>
    %66 = math.exp %65 : vector<2x32xf32>
    %67 = arith.addf %64, %66 : vector<2x32xf32>
    %68 = tpu.reciprocal %67 {approx = true} : vector<2x32xf32> -> vector<2x32xf32>
    %69 = arith.mulf %64, %68 : vector<2x32xf32>
    %70 = vector.shape_cast %69 : vector<2x32xf32> to vector<2x1x32xf32>
    %71 = arith.mulf %66, %68 : vector<2x32xf32>
    %72 = vector.shape_cast %71 : vector<2x32xf32> to vector<2x1x32xf32>
    %73 = vector.broadcast %70 : vector<2x1x32xf32> to vector<2x48x32xf32>
    %74 = arith.mulf %8, %73 : vector<2x48x32xf32>
    %75 = vector.broadcast %72 : vector<2x1x32xf32> to vector<2x48x32xf32>
    %76 = arith.mulf %9, %75 : vector<2x48x32xf32>
    %77 = arith.addf %74, %76 : vector<2x48x32xf32>
    %c0_37 = arith.constant 0 : index
    %c0_38 = arith.constant 0 : index
    %78 = vector.load %arg10[%c0_37, %c0_38] : memref<1x32xf32, #tpu.memory_space<vmem>>, vector<1x32xf32>
    %79 = vector.shape_cast %78 : vector<1x32xf32> to vector<1x1x32xf32>
    %80 = vector.broadcast %79 : vector<1x1x32xf32> to vector<2x48x32xf32>
    %81 = arith.mulf %77, %80 : vector<2x48x32xf32>
    %c0_39 = arith.constant 0 : index
    %c0_40 = arith.constant 0 : index
    %82 = vector.load %arg11[%c0_39, %c0_40] : memref<1x32xf32, #tpu.memory_space<vmem>>, vector<1x32xf32>
    %83 = vector.shape_cast %82 : vector<1x32xf32> to vector<1x1x32xf32>
    %84 = vector.broadcast %83 : vector<1x1x32xf32> to vector<2x48x32xf32>
    %85 = arith.addf %81, %84 : vector<2x48x32xf32>
    %c0_41 = arith.constant 0 : index
    %c0_42 = arith.constant 0 : index
    %c0_43 = arith.constant 0 : index
    %86 = vector.load %arg12[%c0_41, %c0_42, %c0_43] : memref<2x48x32xf32, #tpu.memory_space<vmem>>, vector<2x48x32xf32>
    tpu.vector_store %arg12[%c0_41, %c0_42, %c0_43], %85 {strides = array<i32>} : memref<2x48x32xf32, #tpu.memory_space<vmem>>, vector<2x48x32xf32>,
    return
  }
  func.func @transform_0(%arg0: i32) -> (i32, i32, i32) {
    %c0_i32 = arith.constant 0 : i32
    %c0_i32_0 = arith.constant 0 : i32
    %c0_i32_1 = arith.constant 0 : i32
    return %arg0, %c0_i32, %c0_i32_0 : i32, i32, i32
  }
  func.func @transform_1(%arg0: i32) -> (i32, i32, i32) {
    %c0_i32 = arith.constant 0 : i32
    %c0_i32_0 = arith.constant 0 : i32
    %c0_i32_1 = arith.constant 0 : i32
    return %arg0, %c0_i32, %c0_i32_0 : i32, i32, i32
  }
  func.func @transform_2(%arg0: i32) -> (i32, i32) {
    %c0_i32 = arith.constant 0 : i32
    %c0_i32_0 = arith.constant 0 : i32
    %c0_i32_1 = arith.constant 0 : i32
    return %c0_i32, %c0_i32_0 : i32, i32
  }
  func.func @transform_3(%arg0: i32) -> (i32, i32) {
    %c0_i32 = arith.constant 0 : i32
    %c0_i32_0 = arith.constant 0 : i32
    %c0_i32_1 = arith.constant 0 : i32
    return %c0_i32, %c0_i32_0 : i32, i32
  }
  func.func @transform_4(%arg0: i32) -> (i32, i32) {
    %c0_i32 = arith.constant 0 : i32
    %c0_i32_0 = arith.constant 0 : i32
    %c0_i32_1 = arith.constant 0 : i32
    return %c0_i32, %c0_i32_0 : i32, i32
  }
  func.func @transform_5(%arg0: i32) -> (i32, i32) {
    %c0_i32 = arith.constant 0 : i32
    %c0_i32_0 = arith.constant 0 : i32
    %c0_i32_1 = arith.constant 0 : i32
    return %c0_i32, %c0_i32_0 : i32, i32
  }
  func.func @transform_6(%arg0: i32) -> (i32, i32) {
    %c0_i32 = arith.constant 0 : i32
    %c0_i32_0 = arith.constant 0 : i32
    %c0_i32_1 = arith.constant 0 : i32
    return %c0_i32, %c0_i32_0 : i32, i32
  }
  func.func @transform_7(%arg0: i32) -> (i32, i32) {
    %c0_i32 = arith.constant 0 : i32
    %c0_i32_0 = arith.constant 0 : i32
    %c0_i32_1 = arith.constant 0 : i32
    return %c0_i32, %c0_i32_0 : i32, i32
  }
  func.func @transform_8(%arg0: i32) -> (i32, i32) {
    %c0_i32 = arith.constant 0 : i32
    %c0_i32_0 = arith.constant 0 : i32
    %c0_i32_1 = arith.constant 0 : i32
    return %c0_i32, %c0_i32_0 : i32, i32
  }
  func.func @transform_9(%arg0: i32) -> (i32, i32) {
    %c0_i32 = arith.constant 0 : i32
    %c0_i32_0 = arith.constant 0 : i32
    %c0_i32_1 = arith.constant 0 : i32
    return %c0_i32, %c0_i32_0 : i32, i32
  }
  func.func @transform_10(%arg0: i32) -> (i32, i32) {
    %c0_i32 = arith.constant 0 : i32
    %c0_i32_0 = arith.constant 0 : i32
    %c0_i32_1 = arith.constant 0 : i32
    return %c0_i32, %c0_i32_0 : i32, i32
  }
  func.func @transform_11(%arg0: i32) -> (i32, i32, i32) {
    %c0_i32 = arith.constant 0 : i32
    %c0_i32_0 = arith.constant 0 : i32
    %c0_i32_1 = arith.constant 0 : i32
    return %arg0, %c0_i32, %c0_i32_0 : i32, i32, i32
  }
}

module attributes {stable_mosaic.version = 11 : i64} {
  func.func @_tks_kernel(%arg0: i32, %arg1: memref<2x48x96xbf16, #tpu.memory_space<vmem>>, %arg2: memref<2x48x96xbf16, #tpu.memory_space<vmem>>, %arg3: memref<96x32xbf16, #tpu.memory_space<vmem>>, %arg4: memref<96x32xbf16, #tpu.memory_space<vmem>>, %arg5: memref<2x32xf32, #tpu.memory_space<vmem>>, %arg6: memref<1x2xf32, #tpu.memory_space<vmem>>, %arg7: memref<1x2xf32, #tpu.memory_space<vmem>>, %arg8: memref<2x32xf32, #tpu.memory_space<vmem>>, %arg9: memref<2x32xf32, #tpu.memory_space<vmem>>, %arg10: memref<1x32xf32, #tpu.memory_space<vmem>>, %arg11: memref<1x32xf32, #tpu.memory_space<vmem>>, %arg12: memref<2x48x32xf32, #tpu.memory_space<vmem>>) attributes {dimension_semantics = [#tpu.dimension_semantics<arbitrary>], iteration_bounds = array<i64: 1>, scalar_prefetch = 0 : i64, scratch_operands = 0 : i64, tpu.core_type = #tpu.core_type<tc>, window_params = [{transform_indices = @transform_0, window_bounds = array<i64: 2, 48, 96>}, {transform_indices = @transform_1, window_bounds = array<i64: 2, 48, 96>}, {pipeline_mode = #tpu.pipeline_mode<synchronous>, transform_indices = @transform_2, window_bounds = array<i64: 96, 32>}, {pipeline_mode = #tpu.pipeline_mode<synchronous>, transform_indices = @transform_3, window_bounds = array<i64: 96, 32>}, {pipeline_mode = #tpu.pipeline_mode<synchronous>, transform_indices = @transform_4, window_bounds = array<i64: 2, 32>}, {pipeline_mode = #tpu.pipeline_mode<synchronous>, transform_indices = @transform_5, window_bounds = array<i64: 1, 2>}, {pipeline_mode = #tpu.pipeline_mode<synchronous>, transform_indices = @transform_6, window_bounds = array<i64: 1, 2>}, {pipeline_mode = #tpu.pipeline_mode<synchronous>, transform_indices = @transform_7, window_bounds = array<i64: 2, 32>}, {pipeline_mode = #tpu.pipeline_mode<synchronous>, transform_indices = @transform_8, window_bounds = array<i64: 2, 32>}, {pipeline_mode = #tpu.pipeline_mode<synchronous>, transform_indices = @transform_9, window_bounds = array<i64: 1, 32>}, {pipeline_mode = #tpu.pipeline_mode<synchronous>, transform_indices = @transform_10, window_bounds = array<i64: 1, 32>}, {transform_indices = @transform_11, window_bounds = array<i64: 2, 48, 32>}]} {
    %c0 = arith.constant 0 : index
    %c0_0 = arith.constant 0 : index
    %c0_1 = arith.constant 0 : index
    %0 = vector.load %arg1[%c0, %c0_0, %c0_1] : memref<2x48x96xbf16, #tpu.memory_space<vmem>>, vector<2x48x96xbf16>
    %1 = vector.shape_cast %0 : vector<2x48x96xbf16> to vector<96x96xbf16>
    %c0_2 = arith.constant 0 : index
    %c0_3 = arith.constant 0 : index
    %c0_4 = arith.constant 0 : index
    %2 = vector.load %arg2[%c0_2, %c0_3, %c0_4] : memref<2x48x96xbf16, #tpu.memory_space<vmem>>, vector<2x48x96xbf16>
    %3 = vector.shape_cast %2 : vector<2x48x96xbf16> to vector<96x96xbf16>
    %c0_5 = arith.constant 0 : index
    %c0_6 = arith.constant 0 : index
    %4 = vector.load %arg3[%c0_5, %c0_6] : memref<96x32xbf16, #tpu.memory_space<vmem>>, vector<96x32xbf16>
    %cst = arith.constant dense<0.000000e+00> : vector<96x32xf32>
    %5 = tpu.matmul %1, %4, %cst {dimension_numbers = #tpu.dot_dimension_numbers<[1], [0], [0], [1], [0, 0, 1, 1], [], []>} : vector<96x96xbf16>, vector<96x32xbf16>, vector<96x32xf32> -> vector<96x32xf32>
    %c0_7 = arith.constant 0 : index
    %c0_8 = arith.constant 0 : index
    %6 = vector.load %arg4[%c0_7, %c0_8] : memref<96x32xbf16, #tpu.memory_space<vmem>>, vector<96x32xbf16>
    %cst_9 = arith.constant dense<0.000000e+00> : vector<96x32xf32>
    %7 = tpu.matmul %3, %6, %cst_9 {dimension_numbers = #tpu.dot_dimension_numbers<[1], [0], [0], [1], [0, 0, 1, 1], [], []>} : vector<96x96xbf16>, vector<96x32xbf16>, vector<96x32xf32> -> vector<96x32xf32>
    %8 = vector.shape_cast %5 : vector<96x32xf32> to vector<2x48x32xf32>
    %9 = vector.shape_cast %7 : vector<96x32xf32> to vector<2x48x32xf32>
    %10 = arith.addf %8, %9 : vector<2x48x32xf32>
    %cst_10 = arith.constant dense<0.000000e+00> : vector<2x32xf32>
    %11 = vector.multi_reduction <add>, %10, %cst_10 [1] : vector<2x48x32xf32> to vector<2x32xf32>
    %cst_11 = arith.constant 4.800000e+01 : f32
    %12 = vector.broadcast %cst_11 : f32 to vector<2x32xf32>
    %13 = arith.divf %11, %12 : vector<2x32xf32>
    %cst_12 = arith.constant 0.000000e+00 : f32
    %14 = vector.broadcast %cst_12 : f32 to vector<2x32xf32>
    %cst_13 = arith.constant 0.000000e+00 : f32
    %15 = vector.broadcast %cst_13 : f32 to vector<2x32xf32>
    %c0_14 = arith.constant 0 : index
    %c0_15 = arith.constant 0 : index
    %16 = vector.load %arg5[%c0_14, %c0_15] : memref<2x32xf32, #tpu.memory_space<vmem>>, vector<1x32xf32>
    %17 = vector.broadcast %16 : vector<1x32xf32> to vector<2x32xf32>
    %18 = arith.mulf %13, %17 : vector<2x32xf32>
    %cst_16 = arith.constant dense<0.000000e+00> : vector<2xf32>
    %19 = vector.multi_reduction <add>, %18, %cst_16 [1] : vector<2x32xf32> to vector<2xf32>
    %20 = vector.shape_cast %19 : vector<2xf32> to vector<2x1xf32>
    %c0_17 = arith.constant 0 : index
    %c0_18 = arith.constant 0 : index
    %21 = vector.load %arg6[%c0_17, %c0_18] : memref<1x2xf32, #tpu.memory_space<vmem>>, vector<1x1xf32>
    %22 = vector.broadcast %21 : vector<1x1xf32> to vector<2x1xf32>
    %23 = arith.mulf %20, %22 : vector<2x1xf32>
    %c0_19 = arith.constant 0 : index
    %c0_20 = arith.constant 0 : index
    %24 = vector.load %arg7[%c0_19, %c0_20] : memref<1x2xf32, #tpu.memory_space<vmem>>, vector<1x1xf32>
    %25 = vector.broadcast %24 : vector<1x1xf32> to vector<2x1xf32>
    %26 = arith.addf %23, %25 : vector<2x1xf32>
    %cst_21 = arith.constant 0.000000e+00 : f32
    %27 = vector.broadcast %cst_21 : f32 to vector<2x1xf32>
    %28 = arith.maximumf %26, %27 : vector<2x1xf32>
    %c0_22 = arith.constant 0 : index
    %c0_23 = arith.constant 0 : index
    %29 = vector.load %arg8[%c0_22, %c0_23] : memref<2x32xf32, #tpu.memory_space<vmem>>, vector<1x32xf32>
    %30 = vector.broadcast %28 : vector<2x1xf32> to vector<2x32xf32>
    %31 = vector.broadcast %29 : vector<1x32xf32> to vector<2x32xf32>
    %32 = arith.mulf %30, %31 : vector<2x32xf32>
    %33 = arith.addf %14, %32 : vector<2x32xf32>
    %c0_24 = arith.constant 0 : index
    %c0_25 = arith.constant 0 : index
    %34 = vector.load %arg9[%c0_24, %c0_25] : memref<2x32xf32, #tpu.memory_space<vmem>>, vector<1x32xf32>
    %35 = vector.broadcast %28 : vector<2x1xf32> to vector<2x32xf32>
    %36 = vector.broadcast %34 : vector<1x32xf32> to vector<2x32xf32>
    %37 = arith.mulf %35, %36 : vector<2x32xf32>
    %38 = arith.addf %15, %37 : vector<2x32xf32>
    %c1 = arith.constant 1 : index
    %c0_26 = arith.constant 0 : index
    %39 = vector.load %arg5[%c1, %c0_26] : memref<2x32xf32, #tpu.memory_space<vmem>>, vector<1x32xf32>
    %40 = vector.broadcast %39 : vector<1x32xf32> to vector<2x32xf32>
    %41 = arith.mulf %13, %40 : vector<2x32xf32>
    %cst_27 = arith.constant dense<0.000000e+00> : vector<2xf32>
    %42 = vector.multi_reduction <add>, %41, %cst_27 [1] : vector<2x32xf32> to vector<2xf32>
    %43 = vector.shape_cast %42 : vector<2xf32> to vector<2x1xf32>
    %c0_28 = arith.constant 0 : index
    %c1_29 = arith.constant 1 : index
    %44 = vector.load %arg6[%c0_28, %c1_29] : memref<1x2xf32, #tpu.memory_space<vmem>>, vector<1x1xf32>
    %45 = vector.broadcast %44 : vector<1x1xf32> to vector<2x1xf32>
    %46 = arith.mulf %43, %45 : vector<2x1xf32>
    %c0_30 = arith.constant 0 : index
    %c1_31 = arith.constant 1 : index
    %47 = vector.load %arg7[%c0_30, %c1_31] : memref<1x2xf32, #tpu.memory_space<vmem>>, vector<1x1xf32>
    %48 = vector.broadcast %47 : vector<1x1xf32> to vector<2x1xf32>
    %49 = arith.addf %46, %48 : vector<2x1xf32>
    %cst_32 = arith.constant 0.000000e+00 : f32
    %50 = vector.broadcast %cst_32 : f32 to vector<2x1xf32>
    %51 = arith.maximumf %49, %50 : vector<2x1xf32>
    %c1_33 = arith.constant 1 : index
    %c0_34 = arith.constant 0 : index
    %52 = vector.load %arg8[%c1_33, %c0_34] : memref<2x32xf32, #tpu.memory_space<vmem>>, vector<1x32xf32>
    %53 = vector.broadcast %51 : vector<2x1xf32> to vector<2x32xf32>
    %54 = vector.broadcast %52 : vector<1x32xf32> to vector<2x32xf32>
    %55 = arith.mulf %53, %54 : vector<2x32xf32>
    %56 = arith.addf %33, %55 : vector<2x32xf32>
    %c1_35 = arith.constant 1 : index
    %c0_36 = arith.constant 0 : index
    %57 = vector.load %arg9[%c1_35, %c0_36] : memref<2x32xf32, #tpu.memory_space<vmem>>, vector<1x32xf32>
    %58 = vector.broadcast %51 : vector<2x1xf32> to vector<2x32xf32>
    %59 = vector.broadcast %57 : vector<1x32xf32> to vector<2x32xf32>
    %60 = arith.mulf %58, %59 : vector<2x32xf32>
    %61 = arith.addf %38, %60 : vector<2x32xf32>
    %62 = arith.maximumf %56, %61 : vector<2x32xf32>
    %63 = arith.subf %56, %62 : vector<2x32xf32>
    %64 = math.exp %63 : vector<2x32xf32>
    %65 = arith.subf %61, %62 : vector<2x32xf32>
    %66 = math.exp %65 : vector<2x32xf32>
    %67 = arith.addf %64, %66 : vector<2x32xf32>
    %68 = tpu.reciprocal %67 {approx = true} : vector<2x32xf32> -> vector<2x32xf32>
    %69 = arith.mulf %64, %68 : vector<2x32xf32>
    %70 = vector.shape_cast %69 : vector<2x32xf32> to vector<2x1x32xf32>
    %71 = arith.mulf %66, %68 : vector<2x32xf32>
    %72 = vector.shape_cast %71 : vector<2x32xf32> to vector<2x1x32xf32>
    %73 = vector.broadcast %70 : vector<2x1x32xf32> to vector<2x48x32xf32>
    %74 = arith.mulf %8, %73 : vector<2x48x32xf32>
    %75 = vector.broadcast %72 : vector<2x1x32xf32> to vector<2x48x32xf32>
    %76 = arith.mulf %9, %75 : vector<2x48x32xf32>
    %77 = arith.addf %74, %76 : vector<2x48x32xf32>
    %c0_37 = arith.constant 0 : index
    %c0_38 = arith.constant 0 : index
    %78 = vector.load %arg10[%c0_37, %c0_38] : memref<1x32xf32, #tpu.memory_space<vmem>>, vector<1x32xf32>
    %79 = vector.shape_cast %78 : vector<1x32xf32> to vector<1x1x32xf32>
    %80 = vector.broadcast %79 : vector<1x1x32xf32> to vector<2x48x32xf32>
    %81 = arith.mulf %77, %80 : vector<2x48x32xf32>
    %c0_39 = arith.constant 0 : index
    %c0_40 = arith.constant 0 : index
    %82 = vector.load %arg11[%c0_39, %c0_40] : memref<1x32xf32, #tpu.memory_space<vmem>>, vector<1x32xf32>
    %83 = vector.shape_cast %82 : vector<1x32xf32> to vector<1x1x32xf32>
    %84 = vector.broadcast %83 : vector<1x1x32xf32> to vector<2x48x32xf32>
    %85 = arith.addf %81, %84 : vector<2x48x32xf32>
    %c0_41 = arith.constant 0 : index
    %c0_42 = arith.constant 0 : index
    %c0_43 = arith.constant 0 : index
    %86 = vector.load %arg12[%c0_41, %c0_42, %c0_43] : memref<2x48x32xf32, #tpu.memory_space<vmem>>, vector<2x48x32xf32>
    tpu.vector_store %arg12[%c0_41, %c0_42, %c0_43], %85 {strides = array<i32>} : memref<2x48x32xf32, #tpu.memory_space<vmem>>, vector<2x48x32xf32>,
    return
  }
  func.func @transform_0(%arg0: i32) -> (i32, i32, i32) {
    %c0_i32 = arith.constant 0 : i32
    %c0_i32_0 = arith.constant 0 : i32
    %c0_i32_1 = arith.constant 0 : i32
    return %arg0, %c0_i32, %c0_i32_0 : i32, i32, i32
  }
  func.func @transform_1(%arg0: i32) -> (i32, i32, i32) {
    %c0_i32 = arith.constant 0 : i32
    %c0_i32_0 = arith.constant 0 : i32
    %c0_i32_1 = arith.constant 0 : i32
    return %arg0, %c0_i32, %c0_i32_0 : i32, i32, i32
  }
  func.func @transform_2(%arg0: i32) -> (i32, i32) {
    %c0_i32 = arith.constant 0 : i32
    %c0_i32_0 = arith.constant 0 : i32
    %c0_i32_1 = arith.constant 0 : i32
    return %c0_i32, %c0_i32_0 : i32, i32
  }
  func.func @transform_3(%arg0: i32) -> (i32, i32) {
    %c0_i32 = arith.constant 0 : i32
    %c0_i32_0 = arith.constant 0 : i32
    %c0_i32_1 = arith.constant 0 : i32
    return %c0_i32, %c0_i32_0 : i32, i32
  }
  func.func @transform_4(%arg0: i32) -> (i32, i32) {
    %c0_i32 = arith.constant 0 : i32
    %c0_i32_0 = arith.constant 0 : i32
    %c0_i32_1 = arith.constant 0 : i32
    return %c0_i32, %c0_i32_0 : i32, i32
  }
  func.func @transform_5(%arg0: i32) -> (i32, i32) {
    %c0_i32 = arith.constant 0 : i32
    %c0_i32_0 = arith.constant 0 : i32
    %c0_i32_1 = arith.constant 0 : i32
    return %c0_i32, %c0_i32_0 : i32, i32
  }
  func.func @transform_6(%arg0: i32) -> (i32, i32) {
    %c0_i32 = arith.constant 0 : i32
    %c0_i32_0 = arith.constant 0 : i32
    %c0_i32_1 = arith.constant 0 : i32
    return %c0_i32, %c0_i32_0 : i32, i32
  }
  func.func @transform_7(%arg0: i32) -> (i32, i32) {
    %c0_i32 = arith.constant 0 : i32
    %c0_i32_0 = arith.constant 0 : i32
    %c0_i32_1 = arith.constant 0 : i32
    return %c0_i32, %c0_i32_0 : i32, i32
  }
  func.func @transform_8(%arg0: i32) -> (i32, i32) {
    %c0_i32 = arith.constant 0 : i32
    %c0_i32_0 = arith.constant 0 : i32
    %c0_i32_1 = arith.constant 0 : i32
    return %c0_i32, %c0_i32_0 : i32, i32
  }
  func.func @transform_9(%arg0: i32) -> (i32, i32) {
    %c0_i32 = arith.constant 0 : i32
    %c0_i32_0 = arith.constant 0 : i32
    %c0_i32_1 = arith.constant 0 : i32
    return %c0_i32, %c0_i32_0 : i32, i32
  }
  func.func @transform_10(%arg0: i32) -> (i32, i32) {
    %c0_i32 = arith.constant 0 : i32
    %c0_i32_0 = arith.constant 0 : i32
    %c0_i32_1 = arith.constant 0 : i32
    return %c0_i32, %c0_i32_0 : i32, i32
  }
  func.func @transform_11(%arg0: i32) -> (i32, i32, i32) {
    %c0_i32 = arith.constant 0 : i32
    %c0_i32_0 = arith.constant 0 : i32
    %c0_i32_1 = arith.constant 0 : i32
    return %arg0, %c0_i32, %c0_i32_0 : i32, i32, i32
  }
}

</mosaic_0001>

<bundles_post_ra>
// kernel: tks_forward.1
= control target key start
LH: loop header
LB: loop body
LE: loop exit
PB: predicated region body
PF: predicated region fallthrough
CT: control target
= control target key end

     0   :  { %vm141_vm0 = vcmask 785408   ;;  %vm430_vm1 = vcmask 261120   ;;  %vm478_vm2 = vcmask 1041409   ;;  %vm481_vm3 = vcmask 254976   ;;  %s1212_s2 = inlined_call_operand.vmem [shape: bf16[96,32], index: 2, kind: input, shape index: {}]   ;;  %s1213_s3 = inlined_call_operand.vmem [shape: bf16[96,32], index: 3, kind: input, shape index: {}]   ;;  %s1214_s0 = inlined_call_operand.vmem [shape: bf16[2,48,96], index: 0, kind: input, shape index: {}]   ;;  %s1215_s1 = inlined_call_operand.vmem [shape: bf16[2,48,96], index: 1, kind: input, shape index: {}]   ;;  %s1216_s4 = inlined_call_operand.vmem [shape: f32[2,32], index: 4, kind: input, shape index: {}]   ;;  %s1217_s5 = inlined_call_operand.vmem [shape: f32[1,2], index: 5, kind: input, shape index: {}]   ;;  %s1218_s6 = inlined_call_operand.vmem [shape: f32[1,2], index: 6, kind: input, shape index: {}]   ;;  %s1219_s7 = inlined_call_operand.vmem [shape: f32[2,32], index: 7, kind: input, shape index: {}]   ;;  %s1220_s8 = inlined_call_operand.vmem [shape: f32[2,32], index: 8, kind: input, shape index: {}]   ;;  %s1221_s9 = inlined_call_operand.vmem [shape: f32[1,32], index: 9, kind: input, shape index: {}]   ;;  %s1222_s10 = inlined_call_operand.vmem [shape: f32[1,32], index: 10, kind: input, shape index: {}]   ;;  %s1223_s11 = inlined_call_operand.vmem [shape: f32[2,48,32], index: 11, kind: output, shape index: {}]  }
   0x1   :  { %v849_v0 = vld [vmem:[%s1212_s2] sm:$0xff]   ;;  %v851_v2 = vld [vmem:[%s1212_s2 + $0x8] sm:$0xff]   ;;  %v853_v4 = vld [vmem:[%s1212_s2 + $0x10] sm:$0xff]  }
   0x2   :  { %v850_v1 = vld [vmem:[%s1213_s3] sm:$0xff]   ;;  %795 = vmatprep.subr.bf16.mxu0 %v849_v0  ;;  %v852_v3 = vld [vmem:[%s1213_s3 + $0x8] sm:$0xff]   ;;  %v854_v5 = vld [vmem:[%s1213_s3 + $0x10] sm:$0xff]  }
   0x3   :  { %819 = vmatprep.subr.bf16.mxu1 %v850_v1  ;;  %796 = vmatpush3.bf16.msra.mxu0 %v849_v0  ;;  %v855_v6 = vld [vmem:[%s1212_s2 + $0x18] sm:$0xff]   ;;  %v857_v8 = vld [vmem:[%s1212_s2 + $0x20] sm:$0xff]   ;;  %v859_v12 = vld [vmem:[%s1212_s2 + $0x28] sm:$0xff]  }
   0x4   :  { %820 = vmatpush3.bf16.msra.mxu1 %v850_v1  ;;  %797 = vmatprep.subr.bf16.mxu0 %v851_v2  ;;  %v856_v7 = vld [vmem:[%s1213_s3 + $0x18] sm:$0xff]   ;;  %v858_v9 = vld [vmem:[%s1213_s3 + $0x20] sm:$0xff]   ;;  %v860_v13 = vld [vmem:[%s1213_s3 + $0x28] sm:$0xff]  }
   0x5   :  { %821 = vmatprep.subr.bf16.mxu1 %v852_v3  ;;  %v861_v10 = vld [vmem:[%s1214_s0] sm:$0xff]   ;;  %v863_v14 = vld [vmem:[%s1214_s0 + $0x8] sm:$0xff]   ;;  %v865_v16 = vld [vmem:[%s1214_s0 + $0x10] sm:$0xff]  }
   0x6   :  { %v862_v11 = vld [vmem:[%s1215_s1] sm:$0xff]   ;;  %807 = vmatprep.mubr.msk.bf16.mxu0 %vm141_vm0, %v861_v10  ;;  %v864_v15 = vld [vmem:[%s1215_s1 + $0x8] sm:$0xff]   ;;  %v866_v17 = vld [vmem:[%s1215_s1 + $0x10] sm:$0xff]  }
   0x7   :  { %798 = vmatpush3.bf16.msra.mxu0 %v851_v2  ;;  %831 = vmatprep.mubr.msk.bf16.mxu1 %vm141_vm0, %v862_v11  ;;  %v867_v18 = vld [vmem:[%s1214_s0 + $0x18] sm:$0xff]   ;;  %v869_v20 = vld [vmem:[%s1214_s0 + $0x20] sm:$0xff]   ;;  %v871_v22 = vld [vmem:[%s1214_s0 + $0x28] sm:$0xff]  }
   0x8   :  { %822 = vmatpush3.bf16.msra.mxu1 %v852_v3  ;;  %799 = vmatprep.subr.bf16.mxu0 %v853_v4  ;;  %v868_v19 = vld [vmem:[%s1215_s1 + $0x18] sm:$0xff]   ;;  %v870_v21 = vld [vmem:[%s1215_s1 + $0x20] sm:$0xff]   ;;  %v872_v23 = vld [vmem:[%s1215_s1 + $0x28] sm:$0xff]  }
   0x9   :  { %823 = vmatprep.subr.bf16.mxu1 %v854_v5 }
   0xb   :  { %800 = vmatpush3.bf16.msra.mxu0 %v853_v4 }
   0xc   :  { %824 = vmatpush3.bf16.msra.mxu1 %v854_v5  ;;  %801 = vmatprep.subr.bf16.mxu0 %v855_v6 }
   0xd   :  { %825 = vmatprep.subr.bf16.mxu1 %v856_v7 }
   0xf   :  { %802 = vmatpush3.bf16.msra.mxu0 %v855_v6 }
  0x10   :  { %826 = vmatpush3.bf16.msra.mxu1 %v856_v7  ;;  %803 = vmatprep.subr.bf16.mxu0 %v857_v8 }
  0x11   :  { %827 = vmatprep.subr.bf16.mxu1 %v858_v9 }
  0x13   :  { %804 = vmatpush3.bf16.msra.mxu0 %v857_v8 }
  0x14   :  { %828 = vmatpush3.bf16.msra.mxu1 %v858_v9  ;;  %805 = vmatprep.subr.bf16.mxu0 %v859_v12 }
  0x15   :  { %829 = vmatprep.subr.bf16.mxu1 %v860_v13 }
  0x17   :  { %806 = vmatpush3.bf16.msra.mxu0 %v859_v12 }
  0x18   :  { %830 = vmatpush3.bf16.msra.mxu1 %v860_v13 }
  0x1a   :  { %808 = vmatmul.mubr.msk.bf16.vlgmr.msra.gmra.mrb[0].mxu0 %vm141_vm0, %v863_v14 }
  0x1b   :  { %832 = vmatmul.mubr.msk.bf16.vlgmr.msra.gmra.mrb[0].mxu1 %vm141_vm0, %v864_v15  ;;  %811 = vmatprep.mubr.msk.bf16.mxu0 %vm141_vm0, %v865_v16 }
  0x1c   :  { %835 = vmatprep.mubr.msk.bf16.mxu1 %vm141_vm0, %v866_v17 }
  0x22   :  { %812 = vmatmul.mubr.msk.bf16.gmra.mrb[4].mxu0 %vm141_vm0, %v867_v18 }
  0x23   :  { %836 = vmatmul.mubr.msk.bf16.gmra.mrb[4].mxu1 %vm141_vm0, %v868_v19  ;;  %815 = vmatprep.mubr.msk.bf16.mxu0 %vm141_vm0, %v869_v20 }
  0x24   :  { %839 = vmatprep.mubr.msk.bf16.mxu1 %vm141_vm0, %v870_v21 }
  0x2a   :  { %816 = vmatmul.mubr.msk.bf16.gmra.mrb[8].mxu0 %vm141_vm0, %v871_v22 }
  0x2b   :  { %840 = vmatmul.mubr.msk.bf16.gmra.mrb[8].mxu1 %vm141_vm0, %v872_v23 }
  0xed   :  { %v1026_v24 = vpop.f32.mrb[0].mxu0 }
  0xee   :  { %v1028_v25 = vpop.f32.mrb[0].mxu1  ;;  %v1030_v26 = vpop.f32.mrb[1].mxu0 }
  0xef   :  { %v420_v27 = vadd.f32 %v1028_v25, %v1026_v24  ;;  %v1034_v28 = vpop.f32.mrb[1].mxu1  ;;  %v1036_v29 = vpop.f32.mrb[2].mxu0 }
  0xf0   :  { %v418_v30 = vadd.f32 %v1034_v28, %v1030_v26  ;;  %v1040_v31 = vpop.f32.mrb[2].mxu1  ;;  %v1042_v32 = vpop.f32.mrb[3].mxu0 }
  0xf1   :  { %v421_v33 = vadd.f32 %v1040_v31, %v1036_v29  ;;  %v1046_v34 = vpop.f32.mrb[3].mxu1  ;;  %v434_v40 = vsel %vm430_vm1, %v420_v27, 0.0 }
  0xf2   :  { %v419_v35 = vadd.f32 %v1046_v34, %v1042_v32  ;;  %v431_v36 = vsel %vm430_vm1, %v418_v30, 0.0 }
  0xf3   :  { %v436_v47 = vsel %vm430_vm1, %v421_v33, 0.0 }
  0xf4   :  { %v432_v37 = vsel %vm430_vm1, %v419_v35, 0.0 }
  0xf5   :  { %v433_v38 = vadd.f32 %v432_v37, %v431_v36  ;;  %v1052_v39 = vpop.f32.mrb[4].mxu0 }
  0xf6   :  { %v1055_v41 = vpop.f32.mrb[4].mxu1  ;;  %v1057_v42 = vpop.f32.mrb[5].mxu0 }
  0xf7   :  { %v435_v43 = vadd.f32 %v434_v40, %v433_v38  ;;  %v424_v44 = vadd.f32 %v1055_v41, %v1052_v39  ;;  %v1061_v45 = vpop.f32.mrb[5].mxu1  ;;  %v1063_v46 = vpop.f32.mrb[6].mxu0 }
  0xf8   :  { %v422_v48 = vadd.f32 %v1061_v45, %v1057_v42  ;;  %v1068_v49 = vpop.f32.mrb[6].mxu1  ;;  %v1070_v50 = vpop.f32.mrb[7].mxu0 }
  0xf9   :  { %v437_v51 = vadd.f32 %v436_v47, %v435_v43  ;;  %v425_v52 = vadd.f32 %v1068_v49, %v1063_v46  ;;  %v1074_v53 = vpop.f32.mrb[7].mxu1  ;;  %v448_v56 = vsel %vm430_vm1, %v424_v44, 0.0  ;;  %v761_v43 = vld [vmem:[%s1216_s4] ss:$0 sm:$0xff]  ;;  %v766_v44 = vld [vmem:[%s1216_s4 + $0x1] ss:$0 sm:$0xff] }
  0xfa   :  { %v438_v54 = vsel %vm430_vm1, %v422_v48, 0.0  ;;  %v423_v55 = vadd.f32 %v1074_v53, %v1070_v50 }
  0xfb   :  { %v439_v57 = vadd.f32 %v438_v54, %v437_v51  ;;  %v449_v58 = vsel %vm430_vm1, %v425_v52, 0.0 }
  0xfc   :  { %v450_v59 = vadd.f32 %v449_v58, %v448_v56  ;;  %v440_v60 = vsel %vm430_vm1, %v423_v55, 0.0 }
  0xfd   :  { %v441_v61 = vadd.f32 %v440_v60, %v439_v57  ;;  %v1082_v62 = vpop.f32.mrb[8].mxu0  ;;  %v879_v60 = vmov 0  }
  0xfe   :  { %v1084_v63 = vpop.f32.mrb[8].mxu1  ;;  %v1086_v0 = vpop.f32.mrb[9].mxu0  ;;  %846 = vset.pattern.permute.xlu1 %v879_v60 }
  0xff   :  { %v442_v1 = vrot.slane %v441_v61, 4  ;;  %v428_v2 = vadd.f32 %v1084_v63, %v1082_v62  ;;  %v1090_v3 = vpop.f32.mrb[9].mxu1  ;;  %v1092_v4 = vpop.f32.mrb[10].mxu0 }
 0x100   :  { %v426_v5 = vadd.f32 %v1090_v3, %v1086_v0  ;;  %v1096_v6 = vpop.f32.mrb[10].mxu1  ;;  %v1098_v7 = vpop.f32.mrb[11].mxu0 }
 0x101   :  { %v429_v8 = vadd.f32 %v1096_v6, %v1092_v4  ;;  %v1102_v9 = vpop.f32.mrb[11].mxu1  ;;  %v443_v12 = vadd.f32 %v442_v1, %v441_v61  ;;  %v455_v16 = vsel %vm430_vm1, %v428_v2, 0.0  ;;  %v880_v61 = vmov 1   ;;  %v762_v1 = vld [vmem:[%s1217_s5] ss:$0 sm:$0xff] }
 0x102   :  { %v451_v10 = vsel %vm430_vm1, %v426_v5, 0.0  ;;  %v427_v11 = vadd.f32 %v1102_v9, %v1098_v7  ;;  %848 = vset.pattern.permute.xlu0 %v880_v61  ;;  %v763_v5 = vld [vmem:[%s1218_s6] ss:$0 sm:$0xff] }
 0x103   :  { %v452_v13 = vadd.f32 %v451_v10, %v450_v59  ;;  %v444_v17 = vrot.slane %v443_v12, 2  ;;  %v457_v19 = vsel %vm430_vm1, %v429_v8, 0.0 }
 0x104   :  { %v453_v14 = vsel %vm430_vm1, %v427_v11, 0.0 }
 0x105   :  { %v454_v15 = vadd.f32 %v453_v14, %v452_v13  ;;  %v445_v21 = vadd.f32 %v444_v17, %v443_v12  ;;  %v764_v17 = vld [vmem:[%s1219_s7] ss:$0 sm:$0xff] }
 0x107   :  { %v456_v18 = vadd.f32 %v455_v16, %v454_v15  ;;  %v446_v30 = vrot.slane %v445_v21, 1 }
 0x109   :  { %v458_v20 = vadd.f32 %v457_v19, %v456_v18  ;;  %v447_v35 = vadd.f32 %v446_v30, %v445_v21  ;;  %v765_v18 = vld [vmem:[%s1220_s8] ss:$0 sm:$0xff]  ;;  %v767_v19 = vld [vmem:[%s1219_s7 + $0x1] ss:$0 sm:$0xff] }
 0x10b   :  { %v459_v22 = vrot.slane %v458_v20, 4  ;;  %v466_v38 = vmul.f32 0.020833334, %v447_v35 }
 0x10d   :  { %v460_v23 = vadd.f32 %v459_v22, %v458_v20  ;;  %v473_v51 = vmul.f32 %v761_v43, %v466_v38  ;;  %v526_v54 = vmul.f32 %v766_v44, %v466_v38  ;;  %v768_v20 = vld [vmem:[%s1220_s8 + $0x1] ss:$0 sm:$0xff] }
 0x10f   :  { %v461_v27 = vrot.slane %v460_v23, 2 }
 0x111   :  { %v462_v33 = vadd.f32 %v461_v27, %v460_v23 }
 0x113   :  { %v463_v36 = vrot.slane %v462_v33, 1 }
 0x115   :  { %v464_v37 = vadd.f32 %v463_v36, %v462_v33 }
 0x117   :  { %v467_v40 = vmul.f32 0.020833334, %v464_v37 }
 0x119   :  { %v474_v47 = vmul.f32 %v761_v43, %v467_v40  ;;  %v527_v48 = vmul.f32 %v766_v44, %v467_v40 }
 0x11b   :  { %v477_v52 = vrot.slane %v474_v47, 7  ;;  %v530_v55 = vrot.slane %v527_v48, 7 }
 0x11d   :  { %v479_v56 = vsel %vm478_vm2, %v477_v52, %v473_v51  ;;  %v531_v57 = vsel %vm478_vm2, %v530_v55, %v526_v54  ;;  %v881_v51 = vmov 1966171168   ;;  %v572_v54 = vlaneseq }
 0x11e   :  { %v482_v58 = vsel %vm481_vm3, %v479_v56, 0.0  ;;  %v533_v59 = vsel %vm481_vm3, %v531_v57, 0.0  ;;  %v570_v52 = vunpack.c.l.s4 %v881_v51 }
 0x11f   :  { %483 = vadd.xlane.f32.xlu0 %v482_v58  ;;  %v573_v56 = vshrl.u32 %v572_v54, 7 }
 0x120   :  { %v571_v55 = vunpack.c.0.s8 %v570_v52 }
 0x122   :  { %v574_v57 = vsub.s32 %v571_v55, %v573_v56 }
 0x123   :  { %534 = vadd.xlane.f32.xlu0 %v533_v59 }
 0x1ac   :  { %v484_v2 = vpop.xlane.xlu0 %483 }
 0x1ad   :  { %v492_v8 = vmul.f32 %v762_v1, %v484_v2 }
 0x1af   :  { %v500_v10 = vadd.f32 %v763_v5, %v492_v8 }
 0x1b0   :  { %v535_v11 = vpop.xlane.xlu0 %534 }
 0x1b1   :  { %v536_v12 = vmul.f32 %v762_v1, %v535_v11  ;;  %v501_v13 = vmax.f32 %v500_v10, 0.0 }
 0x1b3   :  { %v537_v14 = vadd.f32 %v763_v5, %v536_v12  ;;  %505 = vperm.xlu1 %846, %v501_v13  }
 0x1b5   :  { %v538_v15 = vmax.f32 %v537_v14, 0.0 }
 0x1b7   :  { %847 = vset.pattern.permute.xlu1 %v880_v61  ;;  %v617_v61 = vsub.s32 0, %v573_v56 }
 0x1b8   :  { %542 = vperm.xlu1 %847, %v538_v15  }
 0x232   :  { %v506_v16 = vpop.permute.xlu1 %505 }
 0x233   :  { %v512_v22 = vmul.f32 %v764_v17, %v506_v16  ;;  %v519_v23 = vmul.f32 %v765_v18, %v506_v16 }
 0x237   :  { %v543_v21 = vpop.permute.xlu1 %542 }
 0x238   :  { %v549_v27 = vmul.f32 %v767_v19, %v543_v21  ;;  %v556_v30 = vmul.f32 %v768_v20, %v543_v21 }
 0x23a   :  { %v550_v33 = vadd.f32 %v549_v27, %v512_v22  ;;  %v557_v35 = vadd.f32 %v556_v30, %v519_v23 }
 0x23c   :  { %v558_v36 = vmax.f32 %v550_v33, %v557_v35 }
 0x23e   :  { %v559_v37 = vsub.f32 %v550_v33, %v558_v36  ;;  %v562_v38 = vsub.f32 %v557_v35, %v558_v36 }
 0x240   :  { %v560_v40 = vmul.f32 1.442695, %v559_v37  ;;  %v563_v43 = vmul.f32 1.442695, %v562_v38 }
 0x242   :  { %873 = vpow2.f32 %v560_v40 }
 0x243   :  { %875 = vpow2.f32 %v563_v43 }
 0x24c   :  { %v874_v44 = vpop.eup %873 }
 0x24d   :  { %v876_v47 = vpop.eup %875 }
 0x24e   :  { %v565_v48 = vadd.f32 %v876_v47, %v874_v44 }
 0x250   :  { %877 = vrcp.f32 %v565_v48 }
 0x25a   :  { %v878_v58 = vpop.eup %877 }
 0x25b   :  { %v567_v59 = vmul.f32 %v878_v58, %v874_v44  ;;  %v591_v60 = vmul.f32 %v878_v58, %v876_v47 }
 0x25d   :  { %v575_v1 = vrot.slane %v567_v59, %v574_v57  ;;  %v599_v2 = vrot.slane %v591_v60, %v574_v57 }
 0x25f   :  { %v576_v5 = vcombine.high %v575_v1, %v575_v1  ;;  %v583_v8 = vrot.slane %v575_v1, %v574_v57  ;;  %v600_v10 = vcombine.high %v599_v2, %v599_v2  ;;  %v607_v11 = vrot.slane %v599_v2, %v574_v57 }
 0x261   :  { %v590_v12 = vrot.slane %v576_v5, %v574_v57  ;;  %v614_v13 = vrot.slane %v600_v10, %v574_v57  ;;  %v618_v14 = vrot.slane %v583_v8, %v617_v61  ;;  %v640_v15 = vrot.slane %v607_v11, %v617_v61 }
 0x263   :  { %v622_v16 = vrot.slane %v590_v12, %v617_v61  ;;  %v625_v17 = vmul.f32 %v618_v14, %v1030_v26  ;;  %v626_v18 = vmul.f32 %v618_v14, %v1042_v32  ;;  %v627_v19 = vmul.f32 %v1026_v24, %v618_v14 }
 0x264   :  { %v628_v20 = vmul.f32 %v1036_v29, %v618_v14  ;;  %v629_v21 = vmul.f32 %v618_v14, %v1057_v42  ;;  %v630_v22 = vmul.f32 %v618_v14, %v1070_v50  ;;  %v644_v23 = vrot.slane %v614_v13, %v617_v61 }
 0x265   :  { %v631_v27 = vmul.f32 %v1052_v39, %v622_v16  ;;  %v632_v30 = vmul.f32 %v1063_v46, %v622_v16  ;;  %v633_v33 = vmul.f32 %v622_v16, %v1086_v0  ;;  %v634_v35 = vmul.f32 %v622_v16, %v1098_v7 }
 0x266   :  { %v635_v26 = vmul.f32 %v1082_v62, %v622_v16  ;;  %v636_v32 = vmul.f32 %v1092_v4, %v622_v16  ;;  %v647_v24 = vmul.f32 %v640_v15, %v1034_v28  ;;  %v648_v29 = vmul.f32 %v640_v15, %v1046_v34  ;;  %v769_v28 = vld [vmem:[%s1221_s9] ss:$0 sm:$0xff] }
 0x267   :  { %v649_v42 = vmul.f32 %v1028_v25, %v640_v15  ;;  %v650_v50 = vmul.f32 %v1040_v31, %v640_v15  ;;  %v651_v39 = vmul.f32 %v640_v15, %v1061_v45  ;;  %v652_v46 = vmul.f32 %v640_v15, %v1074_v53 }
 0x268   :  { %v653_v0 = vmul.f32 %v1055_v41, %v644_v23  ;;  %v654_v7 = vmul.f32 %v1068_v49, %v644_v23  ;;  %v655_v62 = vmul.f32 %v644_v23, %v1090_v3  ;;  %v656_v4 = vmul.f32 %v644_v23, %v1102_v9  ;;  %v770_v9 = vld [vmem:[%s1222_s10] ss:$0 sm:$0xff] }
 0x269   :  { %v657_v25 = vmul.f32 %v1084_v63, %v644_v23  ;;  %v658_v31 = vmul.f32 %v1096_v6, %v644_v23  ;;  %v659_v34 = vadd.f32 %v647_v24, %v625_v17  ;;  %v660_v45 = vadd.f32 %v648_v29, %v626_v18 }
 0x26a   :  { %v661_v36 = vadd.f32 %v649_v42, %v627_v19  ;;  %v662_v53 = vadd.f32 %v650_v50, %v628_v20  ;;  %v663_v37 = vadd.f32 %v651_v39, %v629_v21  ;;  %v664_v41 = vadd.f32 %v652_v46, %v630_v22 }
 0x26b   :  { %v665_v38 = vadd.f32 %v653_v0, %v631_v27  ;;  %v666_v49 = vadd.f32 %v654_v7, %v632_v30  ;;  %v667_v40 = vadd.f32 %v655_v62, %v633_v33  ;;  %v668_v3 = vadd.f32 %v656_v4, %v634_v35 }
 0x26c   :  { %v669_v43 = vadd.f32 %v657_v25, %v635_v26  ;;  %v670_v44 = vadd.f32 %v658_v31, %v636_v32  ;;  %v678_v47 = vmul.f32 %v769_v28, %v659_v34  ;;  %v679_v63 = vmul.f32 %v769_v28, %v660_v45 }
 0x26d   :  { %v680_v48 = vmul.f32 %v769_v28, %v661_v36  ;;  %v681_v6 = vmul.f32 %v769_v28, %v662_v53  ;;  %v682_v51 = vmul.f32 %v769_v28, %v663_v37  ;;  %v683_v52 = vmul.f32 %v769_v28, %v664_v41 }
 0x26e   :  { %v684_v54 = vmul.f32 %v769_v28, %v665_v38  ;;  %v685_v55 = vmul.f32 %v769_v28, %v666_v49  ;;  %v686_v56 = vmul.f32 %v769_v28, %v667_v40  ;;  %v687_v57 = vmul.f32 %v769_v28, %v668_v3 }
 0x26f   :  { %v688_v58 = vmul.f32 %v769_v28, %v669_v43  ;;  %v689_v59 = vmul.f32 %v769_v28, %v670_v44  ;;  %v697_v60 = vadd.f32 %v770_v9, %v678_v47  ;;  %v698_v61 = vadd.f32 %v770_v9, %v679_v63 }
 0x270   :  { %v699_v1 = vadd.f32 %v770_v9, %v680_v48  ;;  %v700_v2 = vadd.f32 %v770_v9, %v681_v6  ;;  %v701_v5 = vadd.f32 %v770_v9, %v682_v51  ;;  %v702_v8 = vadd.f32 %v770_v9, %v683_v52 }
 0x271   :  { %v703_v10 = vadd.f32 %v770_v9, %v684_v54  ;;  %v704_v11 = vadd.f32 %v770_v9, %v685_v55  ;;  %v705_v12 = vadd.f32 %v770_v9, %v686_v56  ;;  %v706_v13 = vadd.f32 %v770_v9, %v687_v57  ;;  %709 = vst.msk [vmem:[%s1223_s11] sm:$0xff] %vm430_vm1, %v697_v60 }
 0x272   :  { %710 = vst.msk [vmem:[%s1223_s11 + $0x8] sm:$0xff] %vm430_vm1, %v698_v61  ;;  %v707_v14 = vadd.f32 %v770_v9, %v688_v58  ;;  %v708_v15 = vadd.f32 %v770_v9, %v689_v59  ;;  %711 = vst.msk [vmem:[%s1223_s11 + $0x10] sm:$0xff] %vm430_vm1, %v699_v1 }
 0x273   :  { %712 = vst.msk [vmem:[%s1223_s11 + $0x18] sm:$0xff] %vm430_vm1, %v700_v2  ;;  %713 = vst.msk [vmem:[%s1223_s11 + $0x20] sm:$0xff] %vm430_vm1, %v701_v5 }
 0x274   :  { %714 = vst.msk [vmem:[%s1223_s11 + $0x28] sm:$0xff] %vm430_vm1, %v702_v8  ;;  %715 = vst.msk [vmem:[%s1223_s11 + $0x30] sm:$0xff] %vm430_vm1, %v703_v10 }
 0x275   :  { %716 = vst.msk [vmem:[%s1223_s11 + $0x38] sm:$0xff] %vm430_vm1, %v704_v11  ;;  %717 = vst.msk [vmem:[%s1223_s11 + $0x40] sm:$0xff] %vm430_vm1, %v705_v12 }
 0x276   :  { %718 = vst.msk [vmem:[%s1223_s11 + $0x48] sm:$0xff] %vm430_vm1, %v706_v13  ;;  %719 = vst.msk [vmem:[%s1223_s11 + $0x50] sm:$0xff] %vm430_vm1, %v707_v14 }
 0x277   :  { %720 = vst.msk [vmem:[%s1223_s11 + $0x58] sm:$0xff] %vm430_vm1, %v708_v15 }

// kernel: tks_forward.1
= control target key start
LH: loop header
LB: loop body
LE: loop exit
PB: predicated region body
PF: predicated region fallthrough
CT: control target
= control target key end

     0   :  { %vm141_vm0 = vcmask 785408   ;;  %vm430_vm1 = vcmask 261120   ;;  %vm478_vm2 = vcmask 1041409   ;;  %vm481_vm3 = vcmask 254976   ;;  %s1212_s2 = inlined_call_operand.vmem [shape: bf16[96,32], index: 2, kind: input, shape index: {}]   ;;  %s1213_s3 = inlined_call_operand.vmem [shape: bf16[96,32], index: 3, kind: input, shape index: {}]   ;;  %s1214_s0 = inlined_call_operand.vmem [shape: bf16[2,48,96], index: 0, kind: input, shape index: {}]   ;;  %s1215_s1 = inlined_call_operand.vmem [shape: bf16[2,48,96], index: 1, kind: input, shape index: {}]   ;;  %s1216_s4 = inlined_call_operand.vmem [shape: f32[2,32], index: 4, kind: input, shape index: {}]   ;;  %s1217_s5 = inlined_call_operand.vmem [shape: f32[1,2], index: 5, kind: input, shape index: {}]   ;;  %s1218_s6 = inlined_call_operand.vmem [shape: f32[1,2], index: 6, kind: input, shape index: {}]   ;;  %s1219_s7 = inlined_call_operand.vmem [shape: f32[2,32], index: 7, kind: input, shape index: {}]   ;;  %s1220_s8 = inlined_call_operand.vmem [shape: f32[2,32], index: 8, kind: input, shape index: {}]   ;;  %s1221_s9 = inlined_call_operand.vmem [shape: f32[1,32], index: 9, kind: input, shape index: {}]   ;;  %s1222_s10 = inlined_call_operand.vmem [shape: f32[1,32], index: 10, kind: input, shape index: {}]   ;;  %s1223_s11 = inlined_call_operand.vmem [shape: f32[2,48,32], index: 11, kind: output, shape index: {}]  }
   0x1   :  { %v849_v0 = vld [vmem:[%s1212_s2] sm:$0xff]   ;;  %v851_v2 = vld [vmem:[%s1212_s2 + $0x8] sm:$0xff]   ;;  %v853_v4 = vld [vmem:[%s1212_s2 + $0x10] sm:$0xff]  }
   0x2   :  { %v850_v1 = vld [vmem:[%s1213_s3] sm:$0xff]   ;;  %795 = vmatprep.subr.bf16.mxu0 %v849_v0  ;;  %v852_v3 = vld [vmem:[%s1213_s3 + $0x8] sm:$0xff]   ;;  %v854_v5 = vld [vmem:[%s1213_s3 + $0x10] sm:$0xff]  }
   0x3   :  { %819 = vmatprep.subr.bf16.mxu1 %v850_v1  ;;  %796 = vmatpush3.bf16.msra.mxu0 %v849_v0  ;;  %v855_v6 = vld [vmem:[%s1212_s2 + $0x18] sm:$0xff]   ;;  %v857_v8 = vld [vmem:[%s1212_s2 + $0x20] sm:$0xff]   ;;  %v859_v12 = vld [vmem:[%s1212_s2 + $0x28] sm:$0xff]  }
   0x4   :  { %820 = vmatpush3.bf16.msra.mxu1 %v850_v1  ;;  %797 = vmatprep.subr.bf16.mxu0 %v851_v2  ;;  %v856_v7 = vld [vmem:[%s1213_s3 + $0x18] sm:$0xff]   ;;  %v858_v9 = vld [vmem:[%s1213_s3 + $0x20] sm:$0xff]   ;;  %v860_v13 = vld [vmem:[%s1213_s3 + $0x28] sm:$0xff]  }
   0x5   :  { %821 = vmatprep.subr.bf16.mxu1 %v852_v3  ;;  %v861_v10 = vld [vmem:[%s1214_s0] sm:$0xff]   ;;  %v863_v14 = vld [vmem:[%s1214_s0 + $0x8] sm:$0xff]   ;;  %v865_v16 = vld [vmem:[%s1214_s0 + $0x10] sm:$0xff]  }
   0x6   :  { %v862_v11 = vld [vmem:[%s1215_s1] sm:$0xff]   ;;  %807 = vmatprep.mubr.msk.bf16.mxu0 %vm141_vm0, %v861_v10  ;;  %v864_v15 = vld [vmem:[%s1215_s1 + $0x8] sm:$0xff]   ;;  %v866_v17 = vld [vmem:[%s1215_s1 + $0x10] sm:$0xff]  }
   0x7   :  { %798 = vmatpush3.bf16.msra.mxu0 %v851_v2  ;;  %831 = vmatprep.mubr.msk.bf16.mxu1 %vm141_vm0, %v862_v11  ;;  %v867_v18 = vld [vmem:[%s1214_s0 + $0x18] sm:$0xff]   ;;  %v869_v20 = vld [vmem:[%s1214_s0 + $0x20] sm:$0xff]   ;;  %v871_v22 = vld [vmem:[%s1214_s0 + $0x28] sm:$0xff]  }
   0x8   :  { %822 = vmatpush3.bf16.msra.mxu1 %v852_v3  ;;  %799 = vmatprep.subr.bf16.mxu0 %v853_v4  ;;  %v868_v19 = vld [vmem:[%s1215_s1 + $0x18] sm:$0xff]   ;;  %v870_v21 = vld [vmem:[%s1215_s1 + $0x20] sm:$0xff]   ;;  %v872_v23 = vld [vmem:[%s1215_s1 + $0x28] sm:$0xff]  }
   0x9   :  { %823 = vmatprep.subr.bf16.mxu1 %v854_v5 }
   0xb   :  { %800 = vmatpush3.bf16.msra.mxu0 %v853_v4 }
   0xc   :  { %824 = vmatpush3.bf16.msra.mxu1 %v854_v5  ;;  %801 = vmatprep.subr.bf16.mxu0 %v855_v6 }
   0xd   :  { %825 = vmatprep.subr.bf16.mxu1 %v856_v7 }
   0xf   :  { %802 = vmatpush3.bf16.msra.mxu0 %v855_v6 }
  0x10   :  { %826 = vmatpush3.bf16.msra.mxu1 %v856_v7  ;;  %803 = vmatprep.subr.bf16.mxu0 %v857_v8 }
  0x11   :  { %827 = vmatprep.subr.bf16.mxu1 %v858_v9 }
  0x13   :  { %804 = vmatpush3.bf16.msra.mxu0 %v857_v8 }
  0x14   :  { %828 = vmatpush3.bf16.msra.mxu1 %v858_v9  ;;  %805 = vmatprep.subr.bf16.mxu0 %v859_v12 }
  0x15   :  { %829 = vmatprep.subr.bf16.mxu1 %v860_v13 }
  0x17   :  { %806 = vmatpush3.bf16.msra.mxu0 %v859_v12 }
  0x18   :  { %830 = vmatpush3.bf16.msra.mxu1 %v860_v13 }
  0x1a   :  { %808 = vmatmul.mubr.msk.bf16.vlgmr.msra.gmra.mrb[0].mxu0 %vm141_vm0, %v863_v14 }
  0x1b   :  { %832 = vmatmul.mubr.msk.bf16.vlgmr.msra.gmra.mrb[0].mxu1 %vm141_vm0, %v864_v15  ;;  %811 = vmatprep.mubr.msk.bf16.mxu0 %vm141_vm0, %v865_v16 }
  0x1c   :  { %835 = vmatprep.mubr.msk.bf16.mxu1 %vm141_vm0, %v866_v17 }
  0x22   :  { %812 = vmatmul.mubr.msk.bf16.gmra.mrb[4].mxu0 %vm141_vm0, %v867_v18 }
  0x23   :  { %836 = vmatmul.mubr.msk.bf16.gmra.mrb[4].mxu1 %vm141_vm0, %v868_v19  ;;  %815 = vmatprep.mubr.msk.bf16.mxu0 %vm141_vm0, %v869_v20 }
  0x24   :  { %839 = vmatprep.mubr.msk.bf16.mxu1 %vm141_vm0, %v870_v21 }
  0x2a   :  { %816 = vmatmul.mubr.msk.bf16.gmra.mrb[8].mxu0 %vm141_vm0, %v871_v22 }
  0x2b   :  { %840 = vmatmul.mubr.msk.bf16.gmra.mrb[8].mxu1 %vm141_vm0, %v872_v23 }
  0xed   :  { %v1026_v24 = vpop.f32.mrb[0].mxu0 }
  0xee   :  { %v1028_v25 = vpop.f32.mrb[0].mxu1  ;;  %v1030_v26 = vpop.f32.mrb[1].mxu0 }
  0xef   :  { %v420_v27 = vadd.f32 %v1028_v25, %v1026_v24  ;;  %v1034_v28 = vpop.f32.mrb[1].mxu1  ;;  %v1036_v29 = vpop.f32.mrb[2].mxu0 }
  0xf0   :  { %v418_v30 = vadd.f32 %v1034_v28, %v1030_v26  ;;  %v1040_v31 = vpop.f32.mrb[2].mxu1  ;;  %v1042_v32 = vpop.f32.mrb[3].mxu0 }
  0xf1   :  { %v421_v33 = vadd.f32 %v1040_v31, %v1036_v29  ;;  %v1046_v34 = vpop.f32.mrb[3].mxu1  ;;  %v434_v40 = vsel %vm430_vm1, %v420_v27, 0.0 }
  0xf2   :  { %v419_v35 = vadd.f32 %v1046_v34, %v1042_v32  ;;  %v431_v36 = vsel %vm430_vm1, %v418_v30, 0.0 }
  0xf3   :  { %v436_v47 = vsel %vm430_vm1, %v421_v33, 0.0 }
  0xf4   :  { %v432_v37 = vsel %vm430_vm1, %v419_v35, 0.0 }
  0xf5   :  { %v433_v38 = vadd.f32 %v432_v37, %v431_v36  ;;  %v1052_v39 = vpop.f32.mrb[4].mxu0 }
  0xf6   :  { %v1055_v41 = vpop.f32.mrb[4].mxu1  ;;  %v1057_v42 = vpop.f32.mrb[5].mxu0 }
  0xf7   :  { %v435_v43 = vadd.f32 %v434_v40, %v433_v38  ;;  %v424_v44 = vadd.f32 %v1055_v41, %v1052_v39  ;;  %v1061_v45 = vpop.f32.mrb[5].mxu1  ;;  %v1063_v46 = vpop.f32.mrb[6].mxu0 }
  0xf8   :  { %v422_v48 = vadd.f32 %v1061_v45, %v1057_v42  ;;  %v1068_v49 = vpop.f32.mrb[6].mxu1  ;;  %v1070_v50 = vpop.f32.mrb[7].mxu0 }
  0xf9   :  { %v437_v51 = vadd.f32 %v436_v47, %v435_v43  ;;  %v425_v52 = vadd.f32 %v1068_v49, %v1063_v46  ;;  %v1074_v53 = vpop.f32.mrb[7].mxu1  ;;  %v448_v56 = vsel %vm430_vm1, %v424_v44, 0.0  ;;  %v761_v43 = vld [vmem:[%s1216_s4] ss:$0 sm:$0xff]  ;;  %v766_v44 = vld [vmem:[%s1216_s4 + $0x1] ss:$0 sm:$0xff] }
  0xfa   :  { %v438_v54 = vsel %vm430_vm1, %v422_v48, 0.0  ;;  %v423_v55 = vadd.f32 %v1074_v53, %v1070_v50 }
  0xfb   :  { %v439_v57 = vadd.f32 %v438_v54, %v437_v51  ;;  %v449_v58 = vsel %vm430_vm1, %v425_v52, 0.0 }
  0xfc   :  { %v450_v59 = vadd.f32 %v449_v58, %v448_v56  ;;  %v440_v60 = vsel %vm430_vm1, %v423_v55, 0.0 }
  0xfd   :  { %v441_v61 = vadd.f32 %v440_v60, %v439_v57  ;;  %v1082_v62 = vpop.f32.mrb[8].mxu0  ;;  %v879_v60 = vmov 0  }
  0xfe   :  { %v1084_v63 = vpop.f32.mrb[8].mxu1  ;;  %v1086_v0 = vpop.f32.mrb[9].mxu0  ;;  %846 = vset.pattern.permute.xlu1 %v879_v60 }
  0xff   :  { %v442_v1 = vrot.slane %v441_v61, 4  ;;  %v428_v2 = vadd.f32 %v1084_v63, %v1082_v62  ;;  %v1090_v3 = vpop.f32.mrb[9].mxu1  ;;  %v1092_v4 = vpop.f32.mrb[10].mxu0 }
 0x100   :  { %v426_v5 = vadd.f32 %v1090_v3, %v1086_v0  ;;  %v1096_v6 = vpop.f32.mrb[10].mxu1  ;;  %v1098_v7 = vpop.f32.mrb[11].mxu0 }
 0x101   :  { %v429_v8 = vadd.f32 %v1096_v6, %v1092_v4  ;;  %v1102_v9 = vpop.f32.mrb[11].mxu1  ;;  %v443_v12 = vadd.f32 %v442_v1, %v441_v61  ;;  %v455_v16 = vsel %vm430_vm1, %v428_v2, 0.0  ;;  %v880_v61 = vmov 1   ;;  %v762_v1 = vld [vmem:[%s1217_s5] ss:$0 sm:$0xff] }
 0x102   :  { %v451_v10 = vsel %vm430_vm1, %v426_v5, 0.0  ;;  %v427_v11 = vadd.f32 %v1102_v9, %v1098_v7  ;;  %848 = vset.pattern.permute.xlu0 %v880_v61  ;;  %v763_v5 = vld [vmem:[%s1218_s6] ss:$0 sm:$0xff] }
 0x103   :  { %v452_v13 = vadd.f32 %v451_v10, %v450_v59  ;;  %v444_v17 = vrot.slane %v443_v12, 2  ;;  %v457_v19 = vsel %vm430_vm1, %v429_v8, 0.0 }
 0x104   :  { %v453_v14 = vsel %vm430_vm1, %v427_v11, 0.0 }
 0x105   :  { %v454_v15 = vadd.f32 %v453_v14, %v452_v13  ;;  %v445_v21 = vadd.f32 %v444_v17, %v443_v12  ;;  %v764_v17 = vld [vmem:[%s1219_s7] ss:$0 sm:$0xff] }
 0x107   :  { %v456_v18 = vadd.f32 %v455_v16, %v454_v15  ;;  %v446_v30 = vrot.slane %v445_v21, 1 }
 0x109   :  { %v458_v20 = vadd.f32 %v457_v19, %v456_v18  ;;  %v447_v35 = vadd.f32 %v446_v30, %v445_v21  ;;  %v765_v18 = vld [vmem:[%s1220_s8] ss:$0 sm:$0xff]  ;;  %v767_v19 = vld [vmem:[%s1219_s7 + $0x1] ss:$0 sm:$0xff] }
 0x10b   :  { %v459_v22 = vrot.slane %v458_v20, 4  ;;  %v466_v38 = vmul.f32 0.020833334, %v447_v35 }
 0x10d   :  { %v460_v23 = vadd.f32 %v459_v22, %v458_v20  ;;  %v473_v51 = vmul.f32 %v761_v43, %v466_v38  ;;  %v526_v54 = vmul.f32 %v766_v44, %v466_v38  ;;  %v768_v20 = vld [vmem:[%s1220_s8 + $0x1] ss:$0 sm:$0xff] }
 0x10f   :  { %v461_v27 = vrot.slane %v460_v23, 2 }
 0x111   :  { %v462_v33 = vadd.f32 %v461_v27, %v460_v23 }
 0x113   :  { %v463_v36 = vrot.slane %v462_v33, 1 }
 0x115   :  { %v464_v37 = vadd.f32 %v463_v36, %v462_v33 }
 0x117   :  { %v467_v40 = vmul.f32 0.020833334, %v464_v37 }
 0x119   :  { %v474_v47 = vmul.f32 %v761_v43, %v467_v40  ;;  %v527_v48 = vmul.f32 %v766_v44, %v467_v40 }
 0x11b   :  { %v477_v52 = vrot.slane %v474_v47, 7  ;;  %v530_v55 = vrot.slane %v527_v48, 7 }
 0x11d   :  { %v479_v56 = vsel %vm478_vm2, %v477_v52, %v473_v51  ;;  %v531_v57 = vsel %vm478_vm2, %v530_v55, %v526_v54  ;;  %v881_v51 = vmov 1966171168   ;;  %v572_v54 = vlaneseq }
 0x11e   :  { %v482_v58 = vsel %vm481_vm3, %v479_v56, 0.0  ;;  %v533_v59 = vsel %vm481_vm3, %v531_v57, 0.0  ;;  %v570_v52 = vunpack.c.l.s4 %v881_v51 }
 0x11f   :  { %483 = vadd.xlane.f32.xlu0 %v482_v58  ;;  %v573_v56 = vshrl.u32 %v572_v54, 7 }
 0x120   :  { %v571_v55 = vunpack.c.0.s8 %v570_v52 }
 0x122   :  { %v574_v57 = vsub.s32 %v571_v55, %v573_v56 }
 0x123   :  { %534 = vadd.xlane.f32.xlu0 %v533_v59 }
 0x1ac   :  { %v484_v2 = vpop.xlane.xlu0 %483 }
 0x1ad   :  { %v492_v8 = vmul.f32 %v762_v1, %v484_v2 }
 0x1af   :  { %v500_v10 = vadd.f32 %v763_v5, %v492_v8 }
 0x1b0   :  { %v535_v11 = vpop.xlane.xlu0 %534 }
 0x1b1   :  { %v536_v12 = vmul.f32 %v762_v1, %v535_v11  ;;  %v501_v13 = vmax.f32 %v500_v10, 0.0 }
 0x1b3   :  { %v537_v14 = vadd.f32 %v763_v5, %v536_v12  ;;  %505 = vperm.xlu1 %846, %v501_v13  }
 0x1b5   :  { %v538_v15 = vmax.f32 %v537_v14, 0.0 }
 0x1b7   :  { %847 = vset.pattern.permute.xlu1 %v880_v61  ;;  %v617_v61 = vsub.s32 0, %v573_v56 }
 0x1b8   :  { %542 = vperm.xlu1 %847, %v538_v15  }
 0x232   :  { %v506_v16 = vpop.permute.xlu1 %505 }
 0x233   :  { %v512_v22 = vmul.f32 %v764_v17, %v506_v16  ;;  %v519_v23 = vmul.f32 %v765_v18, %v506_v16 }
 0x237   :  { %v543_v21 = vpop.permute.xlu1 %542 }
 0x238   :  { %v549_v27 = vmul.f32 %v767_v19, %v543_v21  ;;  %v556_v30 = vmul.f32 %v768_v20, %v543_v21 }
 0x23a   :  { %v550_v33 = vadd.f32 %v549_v27, %v512_v22  ;;  %v557_v35 = vadd.f32 %v556_v30, %v519_v23 }
 0x23c   :  { %v558_v36 = vmax.f32 %v550_v33, %v557_v35 }
 0x23e   :  { %v559_v37 = vsub.f32 %v550_v33, %v558_v36  ;;  %v562_v38 = vsub.f32 %v557_v35, %v558_v36 }
 0x240   :  { %v560_v40 = vmul.f32 1.442695, %v559_v37  ;;  %v563_v43 = vmul.f32 1.442695, %v562_v38 }
 0x242   :  { %873 = vpow2.f32 %v560_v40 }
 0x243   :  { %875 = vpow2.f32 %v563_v43 }
 0x24c   :  { %v874_v44 = vpop.eup %873 }
 0x24d   :  { %v876_v47 = vpop.eup %875 }
 0x24e   :  { %v565_v48 = vadd.f32 %v876_v47, %v874_v44 }
 0x250   :  { %877 = vrcp.f32 %v565_v48 }
 0x25a   :  { %v878_v58 = vpop.eup %877 }
 0x25b   :  { %v567_v59 = vmul.f32 %v878_v58, %v874_v44  ;;  %v591_v60 = vmul.f32 %v878_v58, %v876_v47 }
 0x25d   :  { %v575_v1 = vrot.slane %v567_v59, %v574_v57  ;;  %v599_v2 = vrot.slane %v591_v60, %v574_v57 }
 0x25f   :  { %v576_v5 = vcombine.high %v575_v1, %v575_v1  ;;  %v583_v8 = vrot.slane %v575_v1, %v574_v57  ;;  %v600_v10 = vcombine.high %v599_v2, %v599_v2  ;;  %v607_v11 = vrot.slane %v599_v2, %v574_v57 }
 0x261   :  { %v590_v12 = vrot.slane %v576_v5, %v574_v57  ;;  %v614_v13 = vrot.slane %v600_v10, %v574_v57  ;;  %v618_v14 = vrot.slane %v583_v8, %v617_v61  ;;  %v640_v15 = vrot.slane %v607_v11, %v617_v61 }
 0x263   :  { %v622_v16 = vrot.slane %v590_v12, %v617_v61  ;;  %v625_v17 = vmul.f32 %v618_v14, %v1030_v26  ;;  %v626_v18 = vmul.f32 %v618_v14, %v1042_v32  ;;  %v627_v19 = vmul.f32 %v1026_v24, %v618_v14 }
 0x264   :  { %v628_v20 = vmul.f32 %v1036_v29, %v618_v14  ;;  %v629_v21 = vmul.f32 %v618_v14, %v1057_v42  ;;  %v630_v22 = vmul.f32 %v618_v14, %v1070_v50  ;;  %v644_v23 = vrot.slane %v614_v13, %v617_v61 }
 0x265   :  { %v631_v27 = vmul.f32 %v1052_v39, %v622_v16  ;;  %v632_v30 = vmul.f32 %v1063_v46, %v622_v16  ;;  %v633_v33 = vmul.f32 %v622_v16, %v1086_v0  ;;  %v634_v35 = vmul.f32 %v622_v16, %v1098_v7 }
 0x266   :  { %v635_v26 = vmul.f32 %v1082_v62, %v622_v16  ;;  %v636_v32 = vmul.f32 %v1092_v4, %v622_v16  ;;  %v647_v24 = vmul.f32 %v640_v15, %v1034_v28  ;;  %v648_v29 = vmul.f32 %v640_v15, %v1046_v34  ;;  %v769_v28 = vld [vmem:[%s1221_s9] ss:$0 sm:$0xff] }
 0x267   :  { %v649_v42 = vmul.f32 %v1028_v25, %v640_v15  ;;  %v650_v50 = vmul.f32 %v1040_v31, %v640_v15  ;;  %v651_v39 = vmul.f32 %v640_v15, %v1061_v45  ;;  %v652_v46 = vmul.f32 %v640_v15, %v1074_v53 }
 0x268   :  { %v653_v0 = vmul.f32 %v1055_v41, %v644_v23  ;;  %v654_v7 = vmul.f32 %v1068_v49, %v644_v23  ;;  %v655_v62 = vmul.f32 %v644_v23, %v1090_v3  ;;  %v656_v4 = vmul.f32 %v644_v23, %v1102_v9  ;;  %v770_v9 = vld [vmem:[%s1222_s10] ss:$0 sm:$0xff] }
 0x269   :  { %v657_v25 = vmul.f32 %v1084_v63, %v644_v23  ;;  %v658_v31 = vmul.f32 %v1096_v6, %v644_v23  ;;  %v659_v34 = vadd.f32 %v647_v24, %v625_v17  ;;  %v660_v45 = vadd.f32 %v648_v29, %v626_v18 }
 0x26a   :  { %v661_v36 = vadd.f32 %v649_v42, %v627_v19  ;;  %v662_v53 = vadd.f32 %v650_v50, %v628_v20  ;;  %v663_v37 = vadd.f32 %v651_v39, %v629_v21  ;;  %v664_v41 = vadd.f32 %v652_v46, %v630_v22 }
 0x26b   :  { %v665_v38 = vadd.f32 %v653_v0, %v631_v27  ;;  %v666_v49 = vadd.f32 %v654_v7, %v632_v30  ;;  %v667_v40 = vadd.f32 %v655_v62, %v633_v33  ;;  %v668_v3 = vadd.f32 %v656_v4, %v634_v35 }
 0x26c   :  { %v669_v43 = vadd.f32 %v657_v25, %v635_v26  ;;  %v670_v44 = vadd.f32 %v658_v31, %v636_v32  ;;  %v678_v47 = vmul.f32 %v769_v28, %v659_v34  ;;  %v679_v63 = vmul.f32 %v769_v28, %v660_v45 }
 0x26d   :  { %v680_v48 = vmul.f32 %v769_v28, %v661_v36  ;;  %v681_v6 = vmul.f32 %v769_v28, %v662_v53  ;;  %v682_v51 = vmul.f32 %v769_v28, %v663_v37  ;;  %v683_v52 = vmul.f32 %v769_v28, %v664_v41 }
 0x26e   :  { %v684_v54 = vmul.f32 %v769_v28, %v665_v38  ;;  %v685_v55 = vmul.f32 %v769_v28, %v666_v49  ;;  %v686_v56 = vmul.f32 %v769_v28, %v667_v40  ;;  %v687_v57 = vmul.f32 %v769_v28, %v668_v3 }
 0x26f   :  { %v688_v58 = vmul.f32 %v769_v28, %v669_v43  ;;  %v689_v59 = vmul.f32 %v769_v28, %v670_v44  ;;  %v697_v60 = vadd.f32 %v770_v9, %v678_v47  ;;  %v698_v61 = vadd.f32 %v770_v9, %v679_v63 }
 0x270   :  { %v699_v1 = vadd.f32 %v770_v9, %v680_v48  ;;  %v700_v2 = vadd.f32 %v770_v9, %v681_v6  ;;  %v701_v5 = vadd.f32 %v770_v9, %v682_v51  ;;  %v702_v8 = vadd.f32 %v770_v9, %v683_v52 }
 0x271   :  { %v703_v10 = vadd.f32 %v770_v9, %v684_v54  ;;  %v704_v11 = vadd.f32 %v770_v9, %v685_v55  ;;  %v705_v12 = vadd.f32 %v770_v9, %v686_v56  ;;  %v706_v13 = vadd.f32 %v770_v9, %v687_v57  ;;  %709 = vst.msk [vmem:[%s1223_s11] sm:$0xff] %vm430_vm1, %v697_v60 }
 0x272   :  { %710 = vst.msk [vmem:[%s1223_s11 + $0x8] sm:$0xff] %vm430_vm1, %v698_v61  ;;  %v707_v14 = vadd.f32 %v770_v9, %v688_v58  ;;  %v708_v15 = vadd.f32 %v770_v9, %v689_v59  ;;  %711 = vst.msk [vmem:[%s1223_s11 + $0x10] sm:$0xff] %vm430_vm1, %v699_v1 }
 0x273   :  { %712 = vst.msk [vmem:[%s1223_s11 + $0x18] sm:$0xff] %vm430_vm1, %v700_v2  ;;  %713 = vst.msk [vmem:[%s1223_s11 + $0x20] sm:$0xff] %vm430_vm1, %v701_v5 }
 0x274   :  { %714 = vst.msk [vmem:[%s1223_s11 + $0x28] sm:$0xff] %vm430_vm1, %v702_v8  ;;  %715 = vst.msk [vmem:[%s1223_s11 + $0x30] sm:$0xff] %vm430_vm1, %v703_v10 }
 0x275   :  { %716 = vst.msk [vmem:[%s1223_s11 + $0x38] sm:$0xff] %vm430_vm1, %v704_v11  ;;  %717 = vst.msk [vmem:[%s1223_s11 + $0x40] sm:$0xff] %vm430_vm1, %v705_v12 }
 0x276   :  { %718 = vst.msk [vmem:[%s1223_s11 + $0x48] sm:$0xff] %vm430_vm1, %v706_v13  ;;  %719 = vst.msk [vmem:[%s1223_s11 + $0x50] sm:$0xff] %vm430_vm1, %v707_v14 }
 0x277   :  { %720 = vst.msk [vmem:[%s1223_s11 + $0x58] sm:$0xff] %vm430_vm1, %v708_v15 }

</bundles_post_ra>
